<compile_context>
chip_gen: v7x
topology: tpu7x:2x2x1
jax: 0.10.0
libtpu: 0.0.40
codegen_flags: <defaults>
</compile_context>

<pallas_src>
import jax
import jax.numpy as jnp
from jax.experimental import pallas as pl
from jax.experimental.pallas import tpu as pltpu  # noqa: F401  (TPU backend assumed)

# ---------------- problem sizes (small, consistent with an NCHW conv model) ----
B, CIN, H, W = 2, 4, 16, 16
COUT = 32            # feature dim after global average pool
NCLS = 10            # logits dim
KK = 9 * CIN         # im2col contraction dim (3x3 * Cin) = 36
HW = H * W           # 256
ROWS = B * HW        # 512
BN_EPS = 1e-5
NORM_EPS = 1e-12     # F.normalize eps (clamps the norm itself)


# ============================ fused Pallas kernel ==============================

def _fused_tent_kernel(patches_ref, pool_ref, convw_ref, gamma_ref, beta_ref,
                       mean_ref, var_ref, fcw_ref, fcb_ref,
                       s_logits_ref, s_feats_ref, loss_ref):
    # patches_ref : (ROWS, KK)       shared im2col slab (computed once)
    # pool_ref    : (B, ROWS)        1/HW where row belongs to batch b, else 0
    # convw_ref   : (2, KK, COUT)    [student, teacher] stacked
    # gamma/beta/mean/var_ref : (2, 1, COUT)
    # fcw_ref     : (2, COUT, NCLS)  fcb_ref: (2, 1, NCLS)
    # outputs     : student logits (B, NCLS), student feats (B, COUT), loss (1, 1)
    patches = patches_ref[...]
    pool = pool_ref[...]

    def forward(m):
        # conv3x3 as one MXU matmul over the whole slab — intermediates never
        # leave VMEM / vregs.
        conv = jnp.dot(patches, convw_ref[m],
                       preferred_element_type=jnp.float32)            # (ROWS, COUT)
        # BatchNorm (eval) folded to scale/shift, then ReLU.
        scale = gamma_ref[m] * jax.lax.rsqrt(var_ref[m] + BN_EPS)      # (1, COUT)
        shift = beta_ref[m] - mean_ref[m] * scale                      # (1, COUT)
        y = jnp.maximum(conv * scale + shift, 0.0)
        # Global average pool as a matmul (MXU) instead of an XLU mean-reduce.
        feats = jnp.dot(pool, y, preferred_element_type=jnp.float32)   # (B, COUT)
        logits = (jnp.dot(feats, fcw_ref[m],
                          preferred_element_type=jnp.float32)
                  + fcb_ref[m])                                        # (B, NCLS)
        return logits, feats

    s_logits, s_feats = forward(0)   # student
    _, t_feats = forward(1)          # teacher (logits unused; features are no-grad)

    # proxy loss: mean_B || l2norm(s) - l2norm(t) ||^2  (norm clamped like F.normalize)
    def l2norm(v):
        n = jnp.sqrt(jnp.sum(v * v, axis=-1, keepdims=True))
        return v / jnp.maximum(n, NORM_EPS)

    d = l2norm(s_feats) - l2norm(t_feats)
    per_row = jnp.sum(d * d, axis=-1, keepdims=True)                   # (B, 1)
    loss = jnp.sum(per_row, axis=0, keepdims=True) * (1.0 / B)         # (1, 1)

    s_logits_ref[...] = s_logits.astype(s_logits_ref.dtype)
    s_feats_ref[...] = s_feats.astype(s_feats_ref.dtype)
    loss_ref[...] = loss


def _full_spec(shape):
    nd = len(shape)

    def idx(i):
        return (0,) * nd

    return pl.BlockSpec(shape, idx)


def fused_tent_forward(patches, pool_mat, convw, gamma, beta, mean, var, fcw, fcb):
    """Single pallas_call for student fwd + teacher fwd + proxy loss."""
    return pl.pallas_call(
        _fused_tent_kernel,
        out_shape=(jax.ShapeDtypeStruct((B, NCLS), jnp.float32),
                   jax.ShapeDtypeStruct((B, COUT), jnp.float32),
                   jax.ShapeDtypeStruct((1, 1), jnp.float32)),
        grid=(1,),
        in_specs=[_full_spec((ROWS, KK)),
                  _full_spec((B, ROWS)),
                  _full_spec((2, KK, COUT)),
                  _full_spec((2, 1, COUT)),
                  _full_spec((2, 1, COUT)),
                  _full_spec((2, 1, COUT)),
                  _full_spec((2, 1, COUT)),
                  _full_spec((2, COUT, NCLS)),
                  _full_spec((2, 1, NCLS))],
        out_specs=(_full_spec((B, NCLS)),
                   _full_spec((B, COUT)),
                   _full_spec((1, 1))),
    )(patches, pool_mat, convw, gamma, beta, mean, var, fcw, fcb)


# ================================ glue (plain JAX) =============================

def im2col_3x3(x_nhwc):
    """3x3, stride 1, pad 1 patches -> (B*H*W, 9*Cin). Ordering (ky, kx, cin)."""
    b, h, w, c = x_nhwc.shape
    xp = jnp.pad(x_nhwc, ((0, 0), (1, 1), (1, 1), (0, 0)))
    cols = [xp[:, dy:dy + h, dx:dx + w, :] for dy in range(3) for dx in range(3)]
    patches = jnp.stack(cols, axis=3)            # (B, H, W, 9, Cin)
    return patches.reshape(b * h * w, 9 * c)


def _prepare(x_nchw):
    x_nhwc = jnp.transpose(x_nchw, (0, 2, 3, 1))              # NCHW -> NHWC
    patches = im2col_3x3(x_nhwc)                              # shared by both models
    # pool_mat[b, r] = 1/HW  iff row r belongs to batch b  (constant under jit)
    pool_mat = jnp.repeat(jnp.eye(B, dtype=jnp.float32), HW, axis=1) / float(HW)
    return patches, pool_mat


def _stack(student, teacher):
    """Stack student/teacher params on a leading axis of size 2."""
    def st(key, shape):
        return jnp.stack([student[key].reshape(shape), teacher[key].reshape(shape)])
    return (st("conv_w", (KK, COUT)),
            st("bn_gamma", (1, COUT)), st("bn_beta", (1, COUT)),
            st("bn_mean", (1, COUT)), st("bn_var", (1, COUT)),
            st("fc_w", (COUT, NCLS)), st("fc_b", (1, NCLS)))


@jax.jit
def _tent_step(x_nchw, student, teacher, momentum):
    """forward_and_adapt_proxy: fused fwd + proxy loss + EMA teacher update."""
    patches, pool_mat = _prepare(x_nchw)
    s_logits, s_feats, loss = fused_tent_forward(patches, pool_mat,
                                                 *_stack(student, teacher))
    # momentum_updater(student, teacher): teacher <- m*teacher + (1-m)*student
    new_teacher = jax.tree_util.tree_map(
        lambda t, s: momentum * t + (1.0 - momentum) * s, teacher, student)
    return s_logits, s_feats, loss[0, 0], new_teacher


@jax.jit
def _single_forward(x_nchw, params):
    """steps == 0 path: plain student forward, reusing the fused kernel."""
    patches, pool_mat = _prepare(x_nchw)
    s_logits, s_feats, _ = fused_tent_forward(patches, pool_mat,
                                              *_stack(params, params))
    return s_logits, s_feats


def init_params(key):
    k1, k2 = jax.random.split(key)
    return {
        "conv_w": 0.1 * jax.random.normal(k1, (3, 3, CIN, COUT), jnp.float32),  # HWIO
        "bn_gamma": jnp.ones((COUT,), jnp.float32),
        "bn_beta": jnp.zeros((COUT,), jnp.float32),
        "bn_mean": jnp.zeros((COUT,), jnp.float32),
        "bn_var": jnp.ones((COUT,), jnp.float32),
        "fc_w": 0.1 * jax.random.normal(k2, (COUT, NCLS), jnp.float32),
        "fc_b": jnp.zeros((NCLS,), jnp.float32),
    }


class TentProxyPallas:
    """JAX/Pallas analogue of TentProxy: forward student & teacher, compute the
    proxy loss on features, EMA-update the teacher, return the student output."""

    def __init__(self, student_params, teacher_params, steps=1, episodic=False,
                 epoch=0, momentum=0.999):
        self.student = dict(student_params)
        self.teacher = dict(teacher_params)
        self.steps = steps
        self.episodic = episodic
        self.epoch = epoch
        self.momentum = momentum
        self.loss_history = []
        # saved states for episodic reset (deepcopy(state_dict()) analogue)
        self.student_state = jax.tree_util.tree_map(jnp.array, self.student)
        self.teacher_state = jax.tree_util.tree_map(jnp.array, self.teacher)

    def reset(self):
        self.student = jax.tree_util.tree_map(jnp.array, self.student_state)
        self.teacher = jax.tree_util.tree_map(jnp.array, self.teacher_state)

    def forward(self, x):
        if self.steps == 0:
            return _single_forward(x, self.student)
        if self.episodic:
            self.reset()

        s_logits, s_feats, loss, new_teacher = _tent_step(
            x, self.student, self.teacher, jnp.float32(self.momentum))

        # TODO(synk): optimizer.zero_grad()/loss.backward()/optimizer.step() on BN
        # affine params would need a custom VJP through the Pallas kernel; skipped.

        self.teacher = new_teacher
        # keep the loss as a device scalar; no host round-trip on the hot path
        self.loss_history.append(loss)
        return s_logits, s_feats


# ==================================== main =====================================

if __name__ == "__main__":
    key = jax.random.PRNGKey(0)
    kx, ks, kt = jax.random.split(key, 3)

    x = jax.random.normal(kx, (B, CIN, H, W), dtype=jnp.float32)   # NCHW, as in PyTorch

    student_params = init_params(ks)
    teacher_params = init_params(kt)

    tent = TentProxyPallas(student_params, teacher_params,
                           steps=1, episodic=False, epoch=0)

    logits, feats = tent.forward(x)
    jax.block_until_ready((logits, feats, tent.loss_history[-1]))

    assert logits.shape == (B, NCLS) and feats.shape == (B, COUT)
    assert len(tent.loss_history) == 1
    assert bool(jnp.isfinite(tent.loss_history[-1]))

    print("KERNEL_OK")
</pallas_src>

<mosaic_0001>
module attributes {stable_mosaic.version = 11 : i64} {
  func.func @_fused_tent_kernel(%arg0: i32, %arg1: memref<512x36xf32, #tpu.memory_space<vmem>>, %arg2: memref<2x512xf32, #tpu.memory_space<vmem>>, %arg3: memref<2x36x32xf32, #tpu.memory_space<vmem>>, %arg4: memref<2x1x32xf32, #tpu.memory_space<vmem>>, %arg5: memref<2x1x32xf32, #tpu.memory_space<vmem>>, %arg6: memref<2x1x32xf32, #tpu.memory_space<vmem>>, %arg7: memref<2x1x32xf32, #tpu.memory_space<vmem>>, %arg8: memref<2x32x10xf32, #tpu.memory_space<vmem>>, %arg9: memref<2x1x10xf32, #tpu.memory_space<vmem>>, %arg10: memref<2x10xf32, #tpu.memory_space<vmem>>, %arg11: memref<2x32xf32, #tpu.memory_space<vmem>>, %arg12: memref<1x1xf32, #tpu.memory_space<vmem>>) attributes {dimension_semantics = [#tpu.dimension_semantics<arbitrary>], iteration_bounds = array<i64: 1>, scalar_prefetch = 0 : i64, scratch_operands = 0 : i64, tpu.core_type = #tpu.core_type<tc>, window_params = [{pipeline_mode = #tpu.pipeline_mode<synchronous>, transform_indices = @transform_0, window_bounds = array<i64: 512, 36>}, {pipeline_mode = #tpu.pipeline_mode<synchronous>, transform_indices = @transform_1, window_bounds = array<i64: 2, 512>}, {pipeline_mode = #tpu.pipeline_mode<synchronous>, transform_indices = @transform_2, window_bounds = array<i64: 2, 36, 32>}, {pipeline_mode = #tpu.pipeline_mode<synchronous>, transform_indices = @transform_3, window_bounds = array<i64: 2, 1, 32>}, {pipeline_mode = #tpu.pipeline_mode<synchronous>, transform_indices = @transform_4, window_bounds = array<i64: 2, 1, 32>}, {pipeline_mode = #tpu.pipeline_mode<synchronous>, transform_indices = @transform_5, window_bounds = array<i64: 2, 1, 32>}, {pipeline_mode = #tpu.pipeline_mode<synchronous>, transform_indices = @transform_6, window_bounds = array<i64: 2, 1, 32>}, {pipeline_mode = #tpu.pipeline_mode<synchronous>, transform_indices = @transform_7, window_bounds = array<i64: 2, 32, 10>}, {pipeline_mode = #tpu.pipeline_mode<synchronous>, transform_indices = @transform_8, window_bounds = array<i64: 2, 1, 10>}, {pipeline_mode = #tpu.pipeline_mode<synchronous>, transform_indices = @transform_9, window_bounds = array<i64: 2, 10>}, {pipeline_mode = #tpu.pipeline_mode<synchronous>, transform_indices = @transform_10, window_bounds = array<i64: 2, 32>}, {pipeline_mode = #tpu.pipeline_mode<synchronous>, transform_indices = @transform_11, window_bounds = array<i64: 1, 1>}]} {
    %c0 = arith.constant 0 : index
    %c0_0 = arith.constant 0 : index
    %0 = vector.load %arg1[%c0, %c0_0] : memref<512x36xf32, #tpu.memory_space<vmem>>, vector<512x36xf32>
    %c0_1 = arith.constant 0 : index
    %c0_2 = arith.constant 0 : index
    %1 = vector.load %arg2[%c0_1, %c0_2] : memref<2x512xf32, #tpu.memory_space<vmem>>, vector<2x512xf32>
    %c0_3 = arith.constant 0 : index
    %c0_4 = arith.constant 0 : index
    %c0_5 = arith.constant 0 : index
    %2 = vector.load %arg3[%c0_3, %c0_4, %c0_5] : memref<2x36x32xf32, #tpu.memory_space<vmem>>, vector<1x36x32xf32>
    %3 = vector.shape_cast %2 : vector<1x36x32xf32> to vector<36x32xf32>
    %cst = arith.constant dense<0.000000e+00> : vector<512x32xf32>
    %4 = tpu.matmul %0, %3, %cst {dimension_numbers = #tpu.dot_dimension_numbers<[1], [0], [0], [1], [0, 0, 1, 1], [], []>} : vector<512x36xf32>, vector<36x32xf32>, vector<512x32xf32> -> vector<512x32xf32>
    %c0_6 = arith.constant 0 : index
    %c0_7 = arith.constant 0 : index
    %c0_8 = arith.constant 0 : index
    %5 = vector.load %arg4[%c0_6, %c0_7, %c0_8] : memref<2x1x32xf32, #tpu.memory_space<vmem>>, vector<1x1x32xf32>
    %6 = vector.shape_cast %5 : vector<1x1x32xf32> to vector<1x32xf32>
    %c0_9 = arith.constant 0 : index
    %c0_10 = arith.constant 0 : index
    %c0_11 = arith.constant 0 : index
    %7 = vector.load %arg7[%c0_9, %c0_10, %c0_11] : memref<2x1x32xf32, #tpu.memory_space<vmem>>, vector<1x1x32xf32>
    %8 = vector.shape_cast %7 : vector<1x1x32xf32> to vector<1x32xf32>
    %cst_12 = arith.constant 9.99999974E-6 : f32
    %9 = vector.broadcast %cst_12 : f32 to vector<1x32xf32>
    %10 = arith.addf %8, %9 : vector<1x32xf32>
    %11 = math.rsqrt %10 : vector<1x32xf32>
    %12 = arith.mulf %6, %11 : vector<1x32xf32>
    %c0_13 = arith.constant 0 : index
    %c0_14 = arith.constant 0 : index
    %c0_15 = arith.constant 0 : index
    %13 = vector.load %arg5[%c0_13, %c0_14, %c0_15] : memref<2x1x32xf32, #tpu.memory_space<vmem>>, vector<1x1x32xf32>
    %14 = vector.shape_cast %13 : vector<1x1x32xf32> to vector<1x32xf32>
    %c0_16 = arith.constant 0 : index
    %c0_17 = arith.constant 0 : index
    %c0_18 = arith.constant 0 : index
    %15 = vector.load %arg6[%c0_16, %c0_17, %c0_18] : memref<2x1x32xf32, #tpu.memory_space<vmem>>, vector<1x1x32xf32>
    %16 = vector.shape_cast %15 : vector<1x1x32xf32> to vector<1x32xf32>
    %17 = arith.mulf %16, %12 : vector<1x32xf32>
    %18 = arith.subf %14, %17 : vector<1x32xf32>
    %19 = vector.broadcast %12 : vector<1x32xf32> to vector<512x32xf32>
    %20 = arith.mulf %4, %19 : vector<512x32xf32>
    %21 = vector.broadcast %18 : vector<1x32xf32> to vector<512x32xf32>
    %22 = arith.addf %20, %21 : vector<512x32xf32>
    %cst_19 = arith.constant 0.000000e+00 : f32
    %23 = vector.broadcast %cst_19 : f32 to vector<512x32xf32>
    %24 = arith.maximumf %22, %23 : vector<512x32xf32>
    %cst_20 = arith.constant dense<0.000000e+00> : vector<2x32xf32>
    %25 = tpu.matmul %1, %24, %cst_20 {dimension_numbers = #tpu.dot_dimension_numbers<[1], [0], [0], [1], [0, 0, 1, 1], [], []>} : vector<2x512xf32>, vector<512x32xf32>, vector<2x32xf32> -> vector<2x32xf32>
    %c0_21 = arith.constant 0 : index
    %c0_22 = arith.constant 0 : index
    %c0_23 = arith.constant 0 : index
    %26 = vector.load %arg8[%c0_21, %c0_22, %c0_23] : memref<2x32x10xf32, #tpu.memory_space<vmem>>, vector<1x32x10xf32>
    %27 = vector.shape_cast %26 : vector<1x32x10xf32> to vector<32x10xf32>
    %cst_24 = arith.constant dense<0.000000e+00> : vector<2x10xf32>
    %28 = tpu.matmul %25, %27, %cst_24 {dimension_numbers = #tpu.dot_dimension_numbers<[1], [0], [0], [1], [0, 0, 1, 1], [], []>} : vector<2x32xf32>, vector<32x10xf32>, vector<2x10xf32> -> vector<2x10xf32>
    %c0_25 = arith.constant 0 : index
    %c0_26 = arith.constant 0 : index
    %c0_27 = arith.constant 0 : index
    %29 = vector.load %arg9[%c0_25, %c0_26, %c0_27] : memref<2x1x10xf32, #tpu.memory_space<vmem>>, vector<1x1x10xf32>
    %30 = vector.shape_cast %29 : vector<1x1x10xf32> to vector<1x10xf32>
    %31 = vector.broadcast %30 : vector<1x10xf32> to vector<2x10xf32>
    %32 = arith.addf %28, %31 : vector<2x10xf32>
    %c1 = arith.constant 1 : index
    %c0_28 = arith.constant 0 : index
    %c0_29 = arith.constant 0 : index
    %33 = vector.load %arg3[%c1, %c0_28, %c0_29] : memref<2x36x32xf32, #tpu.memory_space<vmem>>, vector<1x36x32xf32>
    %34 = vector.shape_cast %33 : vector<1x36x32xf32> to vector<36x32xf32>
    %cst_30 = arith.constant dense<0.000000e+00> : vector<512x32xf32>
    %35 = tpu.matmul %0, %34, %cst_30 {dimension_numbers = #tpu.dot_dimension_numbers<[1], [0], [0], [1], [0, 0, 1, 1], [], []>} : vector<512x36xf32>, vector<36x32xf32>, vector<512x32xf32> -> vector<512x32xf32>
    %c1_31 = arith.constant 1 : index
    %c0_32 = arith.constant 0 : index
    %c0_33 = arith.constant 0 : index
    %36 = vector.load %arg4[%c1_31, %c0_32, %c0_33] : memref<2x1x32xf32, #tpu.memory_space<vmem>>, vector<1x1x32xf32>
    %37 = vector.shape_cast %36 : vector<1x1x32xf32> to vector<1x32xf32>
    %c1_34 = arith.constant 1 : index
    %c0_35 = arith.constant 0 : index
    %c0_36 = arith.constant 0 : index
    %38 = vector.load %arg7[%c1_34, %c0_35, %c0_36] : memref<2x1x32xf32, #tpu.memory_space<vmem>>, vector<1x1x32xf32>
    %39 = vector.shape_cast %38 : vector<1x1x32xf32> to vector<1x32xf32>
    %cst_37 = arith.constant 9.99999974E-6 : f32
    %40 = vector.broadcast %cst_37 : f32 to vector<1x32xf32>
    %41 = arith.addf %39, %40 : vector<1x32xf32>
    %42 = math.rsqrt %41 : vector<1x32xf32>
    %43 = arith.mulf %37, %42 : vector<1x32xf32>
    %c1_38 = arith.constant 1 : index
    %c0_39 = arith.constant 0 : index
    %c0_40 = arith.constant 0 : index
    %44 = vector.load %arg5[%c1_38, %c0_39, %c0_40] : memref<2x1x32xf32, #tpu.memory_space<vmem>>, vector<1x1x32xf32>
    %45 = vector.shape_cast %44 : vector<1x1x32xf32> to vector<1x32xf32>
    %c1_41 = arith.constant 1 : index
    %c0_42 = arith.constant 0 : index
    %c0_43 = arith.constant 0 : index
    %46 = vector.load %arg6[%c1_41, %c0_42, %c0_43] : memref<2x1x32xf32, #tpu.memory_space<vmem>>, vector<1x1x32xf32>
    %47 = vector.shape_cast %46 : vector<1x1x32xf32> to vector<1x32xf32>
    %48 = arith.mulf %47, %43 : vector<1x32xf32>
    %49 = arith.subf %45, %48 : vector<1x32xf32>
    %50 = vector.broadcast %43 : vector<1x32xf32> to vector<512x32xf32>
    %51 = arith.mulf %35, %50 : vector<512x32xf32>
    %52 = vector.broadcast %49 : vector<1x32xf32> to vector<512x32xf32>
    %53 = arith.addf %51, %52 : vector<512x32xf32>
    %cst_44 = arith.constant 0.000000e+00 : f32
    %54 = vector.broadcast %cst_44 : f32 to vector<512x32xf32>
    %55 = arith.maximumf %53, %54 : vector<512x32xf32>
    %cst_45 = arith.constant dense<0.000000e+00> : vector<2x32xf32>
    %56 = tpu.matmul %1, %55, %cst_45 {dimension_numbers = #tpu.dot_dimension_numbers<[1], [0], [0], [1], [0, 0, 1, 1], [], []>} : vector<2x512xf32>, vector<512x32xf32>, vector<2x32xf32> -> vector<2x32xf32>
    %57 = arith.mulf %25, %25 : vector<2x32xf32>
    %cst_46 = arith.constant dense<0.000000e+00> : vector<2xf32>
    %58 = vector.multi_reduction <add>, %57, %cst_46 [1] : vector<2x32xf32> to vector<2xf32>
    %59 = vector.shape_cast %58 : vector<2xf32> to vector<2x1xf32>
    %60 = math.sqrt %59 : vector<2x1xf32>
    %cst_47 = arith.constant 9.99999996E-13 : f32
    %61 = vector.broadcast %cst_47 : f32 to vector<2x1xf32>
    %62 = arith.maximumf %60, %61 : vector<2x1xf32>
    %63 = vector.broadcast %62 : vector<2x1xf32> to vector<2x32xf32>
    %64 = arith.divf %25, %63 : vector<2x32xf32>
    %65 = arith.mulf %56, %56 : vector<2x32xf32>
    %cst_48 = arith.constant dense<0.000000e+00> : vector<2xf32>
    %66 = vector.multi_reduction <add>, %65, %cst_48 [1] : vector<2x32xf32> to vector<2xf32>
    %67 = vector.shape_cast %66 : vector<2xf32> to vector<2x1xf32>
    %68 = math.sqrt %67 : vector<2x1xf32>
    %cst_49 = arith.constant 9.99999996E-13 : f32
    %69 = vector.broadcast %cst_49 : f32 to vector<2x1xf32>
    %70 = arith.maximumf %68, %69 : vector<2x1xf32>
    %71 = vector.broadcast %70 : vector<2x1xf32> to vector<2x32xf32>
    %72 = arith.divf %56, %71 : vector<2x32xf32>
    %73 = arith.subf %64, %72 : vector<2x32xf32>
    %74 = arith.mulf %73, %73 : vector<2x32xf32>
    %cst_50 = arith.constant dense<0.000000e+00> : vector<2xf32>
    %75 = vector.multi_reduction <add>, %74, %cst_50 [1] : vector<2x32xf32> to vector<2xf32>
    %76 = vector.shape_cast %75 : vector<2xf32> to vector<2x1xf32>
    %cst_51 = arith.constant dense<0.000000e+00> : vector<1xf32>
    %77 = vector.multi_reduction <add>, %76, %cst_51 [0] : vector<2x1xf32> to vector<1xf32>
    %78 = vector.shape_cast %77 : vector<1xf32> to vector<1x1xf32>
    %cst_52 = arith.constant 5.000000e-01 : f32
    %79 = vector.broadcast %cst_52 : f32 to vector<1x1xf32>
    %80 = arith.mulf %78, %79 : vector<1x1xf32>
    %c0_53 = arith.constant 0 : index
    %c0_54 = arith.constant 0 : index
    %81 = vector.load %arg10[%c0_53, %c0_54] : memref<2x10xf32, #tpu.memory_space<vmem>>, vector<2x10xf32>
    tpu.vector_store %arg10[%c0_53, %c0_54], %32 {strides = array<i32>} : memref<2x10xf32, #tpu.memory_space<vmem>>, vector<2x10xf32>,
    %c0_55 = arith.constant 0 : index
    %c0_56 = arith.constant 0 : index
    %82 = vector.load %arg11[%c0_55, %c0_56] : memref<2x32xf32, #tpu.memory_space<vmem>>, vector<2x32xf32>
    tpu.vector_store %arg11[%c0_55, %c0_56], %25 {strides = array<i32>} : memref<2x32xf32, #tpu.memory_space<vmem>>, vector<2x32xf32>,
    %c0_57 = arith.constant 0 : index
    %c0_58 = arith.constant 0 : index
    %83 = vector.load %arg12[%c0_57, %c0_58] : memref<1x1xf32, #tpu.memory_space<vmem>>, vector<1x1xf32>
    tpu.vector_store %arg12[%c0_57, %c0_58], %80 {strides = array<i32>} : memref<1x1xf32, #tpu.memory_space<vmem>>, vector<1x1xf32>,
    return
  }
  func.func @transform_0(%arg0: i32) -> (i32, i32) {
    %c0_i32 = arith.constant 0 : i32
    %c0_i32_0 = arith.constant 0 : i32
    %c0_i32_1 = arith.constant 0 : i32
    return %c0_i32, %c0_i32_0 : i32, i32
  }
  func.func @transform_1(%arg0: i32) -> (i32, i32) {
    %c0_i32 = arith.constant 0 : i32
    %c0_i32_0 = arith.constant 0 : i32
    %c0_i32_1 = arith.constant 0 : i32
    return %c0_i32, %c0_i32_0 : i32, i32
  }
  func.func @transform_2(%arg0: i32) -> (i32, i32, i32) {
    %c0_i32 = arith.constant 0 : i32
    %c0_i32_0 = arith.constant 0 : i32
    %c0_i32_1 = arith.constant 0 : i32
    %c0_i32_2 = arith.constant 0 : i32
    return %c0_i32, %c0_i32_0, %c0_i32_1 : i32, i32, i32
  }
  func.func @transform_3(%arg0: i32) -> (i32, i32, i32) {
    %c0_i32 = arith.constant 0 : i32
    %c0_i32_0 = arith.constant 0 : i32
    %c0_i32_1 = arith.constant 0 : i32
    %c0_i32_2 = arith.constant 0 : i32
    return %c0_i32, %c0_i32_0, %c0_i32_1 : i32, i32, i32
  }
  func.func @transform_4(%arg0: i32) -> (i32, i32, i32) {
    %c0_i32 = arith.constant 0 : i32
    %c0_i32_0 = arith.constant 0 : i32
    %c0_i32_1 = arith.constant 0 : i32
    %c0_i32_2 = arith.constant 0 : i32
    return %c0_i32, %c0_i32_0, %c0_i32_1 : i32, i32, i32
  }
  func.func @transform_5(%arg0: i32) -> (i32, i32, i32) {
    %c0_i32 = arith.constant 0 : i32
    %c0_i32_0 = arith.constant 0 : i32
    %c0_i32_1 = arith.constant 0 : i32
    %c0_i32_2 = arith.constant 0 : i32
    return %c0_i32, %c0_i32_0, %c0_i32_1 : i32, i32, i32
  }
  func.func @transform_6(%arg0: i32) -> (i32, i32, i32) {
    %c0_i32 = arith.constant 0 : i32
    %c0_i32_0 = arith.constant 0 : i32
    %c0_i32_1 = arith.constant 0 : i32
    %c0_i32_2 = arith.constant 0 : i32
    return %c0_i32, %c0_i32_0, %c0_i32_1 : i32, i32, i32
  }
  func.func @transform_7(%arg0: i32) -> (i32, i32, i32) {
    %c0_i32 = arith.constant 0 : i32
    %c0_i32_0 = arith.constant 0 : i32
    %c0_i32_1 = arith.constant 0 : i32
    %c0_i32_2 = arith.constant 0 : i32
    return %c0_i32, %c0_i32_0, %c0_i32_1 : i32, i32, i32
  }
  func.func @transform_8(%arg0: i32) -> (i32, i32, i32) {
    %c0_i32 = arith.constant 0 : i32
    %c0_i32_0 = arith.constant 0 : i32
    %c0_i32_1 = arith.constant 0 : i32
    %c0_i32_2 = arith.constant 0 : i32
    return %c0_i32, %c0_i32_0, %c0_i32_1 : i32, i32, i32
  }
  func.func @transform_9(%arg0: i32) -> (i32, i32) {
    %c0_i32 = arith.constant 0 : i32
    %c0_i32_0 = arith.constant 0 : i32
    %c0_i32_1 = arith.constant 0 : i32
    return %c0_i32, %c0_i32_0 : i32, i32
  }
  func.func @transform_10(%arg0: i32) -> (i32, i32) {
    %c0_i32 = arith.constant 0 : i32
    %c0_i32_0 = arith.constant 0 : i32
    %c0_i32_1 = arith.constant 0 : i32
    return %c0_i32, %c0_i32_0 : i32, i32
  }
  func.func @transform_11(%arg0: i32) -> (i32, i32) {
    %c0_i32 = arith.constant 0 : i32
    %c0_i32_0 = arith.constant 0 : i32
    %c0_i32_1 = arith.constant 0 : i32
    return %c0_i32, %c0_i32_0 : i32, i32
  }
}

</mosaic_0001>

<bundles_post_ra>
// kernel: _tent_step.1
= control target key start
LH: loop header
LB: loop body
LE: loop exit
PB: predicated region body
PF: predicated region fallthrough
CT: control target
= control target key end

     0   :  { %17 = vsyncpa [#allocation3], 0  ;;  %vm107_vm0 = vcmask 293888   ;;  %vm300_vm1 = vcmask 1043456   ;;  %s4028_s0 = inlined_call_operand.vmem [shape: f32[512,36], index: 0, kind: input, shape index: {}]   ;;  %s4029_s1 = inlined_call_operand.vmem [shape: f32[2,512], index: 1, kind: input, shape index: {}]   ;;  %s4030_s2 = inlined_call_operand.vmem [shape: f32[2,36,32], index: 2, kind: input, shape index: {}]   ;;  %s4031_s3 = inlined_call_operand.vmem [shape: f32[2,1,32], index: 3, kind: input, shape index: {}]   ;;  %s4032_s4 = inlined_call_operand.vmem [shape: f32[2,1,32], index: 4, kind: input, shape index: {}]   ;;  %s4033_s5 = inlined_call_operand.vmem [shape: f32[2,1,32], index: 5, kind: input, shape index: {}]   ;;  %s4034_s6 = inlined_call_operand.vmem [shape: f32[2,1,32], index: 6, kind: input, shape index: {}]   ;;  %s4035_s7 = inlined_call_operand.vmem [shape: f32[2,32,10], index: 7, kind: input, shape index: {}]   ;;  %s4036_s8 = inlined_call_operand.vmem [shape: f32[2,1,10], index: 8, kind: input, shape index: {}]   ;;  %s4037_s9 = inlined_call_operand.hbm [shape: f32[2,10], index: 9, kind: output, shape index: {0}]   ;;  %s4038_s10 = inlined_call_operand.hbm [shape: f32[2,32], index: 10, kind: output, shape index: {1}]   ;;  %s4039_s11 = inlined_call_operand.hbm [shape: f32[1,1], index: 11, kind: output, shape index: {2}]  }
   0x1   :  { %v102_v0 = vld [vmem:[%s4030_s2] sm:$0xff]  ;;  %v103_v1 = vld [vmem:[%s4030_s2 + $0x8] sm:$0xff]  ;;  %v104_v2 = vld [vmem:[%s4030_s2 + $0x10] sm:$0xff] }
   0x2   :  { %v2636_v3 = vpack.c.bf16 %v103_v1, %v102_v0  ;;  %v105_v4 = vld [vmem:[%s4030_s2 + $0x18] sm:$0xff]  ;;  %v37_v5 = vld [vmem:[%s4028_s0] sm:$0xff]  ;;  %v38_v8 = vld [vmem:[%s4028_s0 + $0x8] sm:$0xff] }
   0x3   :  { %v2640_v6 = vpack.c.bf16 %v105_v4, %v104_v2  ;;  %2423 = vmatprep.mubr.msk.f32.mxu0 %vm107_vm0, %v37_v5  ;;  %v106_v7 = vld [vmem:[%s4030_s2 + $0x20] sm:$0xf]  ;;  %v39_v9 = vld [vmem:[%s4028_s0 + $0x10] sm:$0xff]  ;;  %v40_v10 = vld [vmem:[%s4028_s0 + $0x18] sm:$0xff] }
   0x4   :  { %2637 = vmatprep.subr.bf16.mxu0 %v2636_v3  ;;  %v41_v11 = vld [vmem:[%s4028_s0 + $0x20] sm:$0xff]  ;;  %v42_v12 = vld [vmem:[%s4028_s0 + $0x28] sm:$0xff]  ;;  %v43_v13 = vld [vmem:[%s4028_s0 + $0x30] sm:$0xff] }
   0x5   :  { %2639 = vmatpush3.bf16.msra.mxu0 %v2636_v3  ;;  %v44_v14 = vld [vmem:[%s4028_s0 + $0x38] sm:$0xff]  ;;  %v45_v15 = vld [vmem:[%s4028_s0 + $0x40] sm:$0xff] }
   0x6   :  { %2641 = vmatprep.subr.bf16.mxu0 %v2640_v6 }
   0x9   :  { %2643 = vmatpush3.bf16.msra.mxu0 %v2640_v6 }
   0xa   :  { %2421 = vmatprep.subr.msk.mxu0 %vm300_vm1, %v106_v7 }
   0xd   :  { %2422 = vmatpush3.msk.msra.mxu0 %vm300_vm1, %v106_v7 }
   0xe   :  { %2424 = vmatmul.mubr.msk.f32.vlgmr.msra.gmra.mrb[0].mxu0 %vm107_vm0, %v38_v8 }
   0xf   :  { %2426 = vmatprep.mubr.msk.f32.mxu0 %vm107_vm0, %v39_v9 }
  0x12   :  { %2427 = vmatmul.mubr.msk.f32.gmra.mrb[2].mxu0 %vm107_vm0, %v40_v10 }
  0x13   :  { %2429 = vmatprep.mubr.msk.f32.mxu0 %vm107_vm0, %v41_v11 }
  0x16   :  { %2430 = vmatmul.mubr.msk.f32.gmra.mrb[4].mxu0 %vm107_vm0, %v42_v12 }
  0x17   :  { %2432 = vmatprep.mubr.msk.f32.mxu0 %vm107_vm0, %v43_v13 }
  0x18   :  { %18 = vsyncpa [#allocation5], 0  ;;  %v3008_v16 = vld [vmem:[%s4028_s0 + $0x48] sm:$0xff]  ;;  %v3013_v17 = vld [vmem:[%s4028_s0 + $0x50] sm:$0xff]  ;;  %v699_v11 = vlaneseq  ;;  %vm2887_vm2 = vmmov 0   ;;  %vm1075_vm3 = vcmask 261120  }
  0x19   :  { %v3022_v18 = vld [vmem:[%s4028_s0 + $0x58] sm:$0xff]  ;;  %v3027_v19 = vld [vmem:[%s4028_s0 + $0x60] sm:$0xff]  ;;  %v3036_v20 = vld [vmem:[%s4028_s0 + $0x68] sm:$0xff]  ;;  %vm1901_vm4 = vcmask 254976   ;;  %vm1943_vm5 = vcmask 74752  }
  0x1a   :  { %2433 = vmatmul.mubr.msk.f32.gmra.mrb[6].mxu0 %vm107_vm0, %v44_v14  ;;  %v3041_v21 = vld [vmem:[%s4028_s0 + $0x70] sm:$0xff]  ;;  %v3050_v22 = vld [vmem:[%s4028_s0 + $0x78] sm:$0xff]  ;;  %v3055_v23 = vld [vmem:[%s4028_s0 + $0x80] sm:$0xff]  ;;  %v700_v14 = vshrl.u32 %v699_v11, 7 }
  0x1b   :  { %2435 = vmatprep.mubr.msk.f32.mxu0 %vm107_vm0, %v45_v15  ;;  %v3064_v24 = vld [vmem:[%s4028_s0 + $0x88] sm:$0xff]  ;;  %v3069_v25 = vld [vmem:[%s4028_s0 + $0x90] sm:$0xff]  ;;  %v3078_v26 = vld [vmem:[%s4028_s0 + $0x98] sm:$0xff] }
  0x1c   :  { %v3083_v27 = vld [vmem:[%s4028_s0 + $0xa0] sm:$0xff]  ;;  %v3092_v28 = vld [vmem:[%s4028_s0 + $0xa8] sm:$0xff]  ;;  %v3097_v29 = vld [vmem:[%s4028_s0 + $0xb0] sm:$0xff] }
  0x1d   :  { %v3106_v30 = vld [vmem:[%s4028_s0 + $0xb8] sm:$0xff]  ;;  %v3111_v31 = vld [vmem:[%s4028_s0 + $0xc0] sm:$0xff]  ;;  %v3120_v32 = vld [vmem:[%s4028_s0 + $0xc8] sm:$0xff] }
  0x1e   :  { %2436 = vmatmul.mubr.msk.f32.gmra.mrb[8].mxu0 %vm107_vm0, %v3008_v16  ;;  %v3125_v33 = vld [vmem:[%s4028_s0 + $0xd0] sm:$0xff]  ;;  %v3134_v34 = vld [vmem:[%s4028_s0 + $0xd8] sm:$0xff]  ;;  %v3139_v35 = vld [vmem:[%s4028_s0 + $0xe0] sm:$0xff] }
  0x1f   :  { %2438 = vmatprep.mubr.msk.f32.mxu0 %vm107_vm0, %v3013_v17  ;;  %v3148_v36 = vld [vmem:[%s4028_s0 + $0xe8] sm:$0xff]  ;;  %v3153_v37 = vld [vmem:[%s4028_s0 + $0xf0] sm:$0xff]  ;;  %v3162_v38 = vld [vmem:[%s4028_s0 + $0xf8] sm:$0xff] }
  0x20   :  { %v3167_v39 = vld [vmem:[%s4028_s0 + $0x100] sm:$0xff]  ;;  %v3176_v40 = vld [vmem:[%s4028_s0 + $0x108] sm:$0xff]  ;;  %v3181_v41 = vld [vmem:[%s4028_s0 + $0x110] sm:$0xff] }
  0x21   :  { %v3190_v42 = vld [vmem:[%s4028_s0 + $0x118] sm:$0xff]  ;;  %v3195_v43 = vld [vmem:[%s4028_s0 + $0x120] sm:$0xff]  ;;  %v3204_v44 = vld [vmem:[%s4028_s0 + $0x128] sm:$0xff] }
  0x22   :  { %2439 = vmatmul.mubr.msk.f32.gmra.mrb[10].mxu0 %vm107_vm0, %v3022_v18  ;;  %v3209_v45 = vld [vmem:[%s4028_s0 + $0x130] sm:$0xff]  ;;  %v3218_v46 = vld [vmem:[%s4028_s0 + $0x138] sm:$0xff]  ;;  %v3223_v47 = vld [vmem:[%s4028_s0 + $0x140] sm:$0xff] }
  0x23   :  { %2441 = vmatprep.mubr.msk.f32.mxu0 %vm107_vm0, %v3027_v19  ;;  %v3232_v48 = vld [vmem:[%s4028_s0 + $0x148] sm:$0xff]  ;;  %v3237_v49 = vld [vmem:[%s4028_s0 + $0x150] sm:$0xff]  ;;  %v3246_v50 = vld [vmem:[%s4028_s0 + $0x158] sm:$0xff] }
  0x24   :  { %4064 = vst [vmem:[#allocation9_spill] sm:$0xff] %v3246_v50  ;;  %v3251_v51 = vld [vmem:[%s4028_s0 + $0x160] sm:$0xff]  ;;  %v3260_v52 = vld [vmem:[%s4028_s0 + $0x168] sm:$0xff]  ;;  %v3265_v53 = vld [vmem:[%s4028_s0 + $0x170] sm:$0xff] }
  0x25   :  { %4065 = vst [vmem:[#allocation10_spill] sm:$0xff] %v3251_v51  ;;  %4066 = vst [vmem:[#allocation11_spill] sm:$0xff] %v3260_v52  ;;  %v3274_v54 = vld [vmem:[%s4028_s0 + $0x178] sm:$0xff]  ;;  %v3279_v55 = vld [vmem:[%s4028_s0 + $0x180] sm:$0xff] }
  0x26   :  { %2442 = vmatmul.mubr.msk.f32.gmra.mrb[12].mxu0 %vm107_vm0, %v3036_v20  ;;  %4067 = vst [vmem:[#allocation12_spill] sm:$0xff] %v3265_v53  ;;  %4068 = vst [vmem:[#allocation13_spill] sm:$0xff] %v3274_v54  ;;  %v3288_v56 = vld [vmem:[%s4028_s0 + $0x188] sm:$0xff]  ;;  %v3293_v57 = vld [vmem:[%s4028_s0 + $0x190] sm:$0xff] }
  0x27   :  { %2444 = vmatprep.mubr.msk.f32.mxu0 %vm107_vm0, %v3041_v21  ;;  %4069 = vst [vmem:[#allocation14_spill] sm:$0xff] %v3279_v55  ;;  %4070 = vst [vmem:[#allocation15_spill] sm:$0xff] %v3288_v56  ;;  %v3302_v58 = vld [vmem:[%s4028_s0 + $0x198] sm:$0xff]  ;;  %v3307_v59 = vld [vmem:[%s4028_s0 + $0x1a0] sm:$0xff] }
  0x28   :  { %4071 = vst [vmem:[#allocation16_spill] sm:$0xff] %v3293_v57  ;;  %4072 = vst [vmem:[#allocation17_spill] sm:$0xff] %v3302_v58  ;;  %v3316_v60 = vld [vmem:[%s4028_s0 + $0x1a8] sm:$0xff]  ;;  %v3321_v61 = vld [vmem:[%s4028_s0 + $0x1b0] sm:$0xff] }
  0x29   :  { %4073 = vst [vmem:[#allocation18_spill] sm:$0xff] %v3307_v59  ;;  %4074 = vst [vmem:[#allocation19_spill] sm:$0xff] %v3316_v60  ;;  %v3330_v62 = vld [vmem:[%s4028_s0 + $0x1b8] sm:$0xff]  ;;  %v3335_v63 = vld [vmem:[%s4028_s0 + $0x1c0] sm:$0xff] }
  0x2a   :  { %2445 = vmatmul.mubr.msk.f32.gmra.mrb[14].mxu0 %vm107_vm0, %v3050_v22  ;;  %4075 = vst [vmem:[#allocation20_spill] sm:$0xff] %v3321_v61  ;;  %4076 = vst [vmem:[#allocation21_spill] sm:$0xff] %v3330_v62  ;;  %v3344_v0 = vld [vmem:[%s4028_s0 + $0x1c8] sm:$0xff]  ;;  %v3349_v1 = vld [vmem:[%s4028_s0 + $0x1d0] sm:$0xff] }
  0x2b   :  { %2447 = vmatprep.mubr.msk.f32.mxu0 %vm107_vm0, %v3055_v23  ;;  %4077 = vst [vmem:[#allocation22_spill] sm:$0xff] %v3335_v63  ;;  %4078 = vst [vmem:[#allocation23_spill] sm:$0xff] %v3344_v0  ;;  %v3358_v2 = vld [vmem:[%s4028_s0 + $0x1d8] sm:$0xff]  ;;  %v3363_v3 = vld [vmem:[%s4028_s0 + $0x1e0] sm:$0xff] }
  0x2c   :  { %4079 = vst [vmem:[#allocation24_spill] sm:$0xff] %v3349_v1  ;;  %4080 = vst [vmem:[#allocation25_spill] sm:$0xff] %v3358_v2  ;;  %v3372_v4 = vld [vmem:[%s4028_s0 + $0x1e8] sm:$0xff]  ;;  %v3377_v5 = vld [vmem:[%s4028_s0 + $0x1f0] sm:$0xff] }
  0x2d   :  { %4081 = vst [vmem:[#allocation26_spill] sm:$0xff] %v3363_v3  ;;  %4082 = vst [vmem:[#allocation27_spill] sm:$0xff] %v3372_v4  ;;  %v3386_v6 = vld [vmem:[%s4028_s0 + $0x1f8] sm:$0xff]  ;;  %v690_v7 = vld [vmem:[%s4034_s6] sm:$0x1] }
  0x2e   :  { %2448 = vmatmul.mubr.msk.f32.gmra.mrb[16].mxu0 %vm107_vm0, %v3064_v24  ;;  %4083 = vst [vmem:[#allocation28_spill] sm:$0xff] %v3377_v5  ;;  %4084 = vst [vmem:[#allocation29_spill] sm:$0xff] %v3386_v6  ;;  %v691_v8 = vadd.f32 1e-05, %v690_v7  ;;  %v689_v10 = vld [vmem:[%s4031_s3] sm:$0x1] }
  0x2f   :  { %2450 = vmatprep.mubr.msk.f32.mxu0 %vm107_vm0, %v3069_v25  ;;  %v695_v13 = vld [vmem:[%s4033_s5] sm:$0x1] }
  0x30   :  { %2794 = vrsqrt.f32 %v691_v8 }
  0x32   :  { %2451 = vmatmul.mubr.msk.f32.gmra.mrb[18].mxu0 %vm107_vm0, %v3078_v26 }
  0x33   :  { %2453 = vmatprep.mubr.msk.f32.mxu0 %vm107_vm0, %v3083_v27 }
  0x36   :  { %2454 = vmatmul.mubr.msk.f32.gmra.mrb[20].mxu0 %vm107_vm0, %v3092_v28 }
  0x37   :  { %2456 = vmatprep.mubr.msk.f32.mxu0 %vm107_vm0, %v3097_v29 }
  0x3a   :  { %2457 = vmatmul.mubr.msk.f32.gmra.mrb[22].mxu0 %vm107_vm0, %v3106_v30  ;;  %v2795_v9 = vpop.eup %2794 }
  0x3b   :  { %2459 = vmatprep.mubr.msk.f32.mxu0 %vm107_vm0, %v3111_v31  ;;  %v693_v12 = vmul.f32 %v2795_v9, %v689_v10 }
  0x3d   :  { %v696_v15 = vmul.f32 %v695_v13, %v693_v12 }
  0x3e   :  { %2460 = vmatmul.mubr.msk.f32.gmra.mrb[24].mxu0 %vm107_vm0, %v3120_v32 }
  0x3f   :  { %2462 = vmatprep.mubr.msk.f32.mxu0 %vm107_vm0, %v3125_v33 }
  0x42   :  { %2463 = vmatmul.mubr.msk.f32.gmra.mrb[26].mxu0 %vm107_vm0, %v3134_v34 }
  0x43   :  { %2465 = vmatprep.mubr.msk.f32.mxu0 %vm107_vm0, %v3139_v35 }
  0x46   :  { %2466 = vmatmul.mubr.msk.f32.gmra.mrb[28].mxu0 %vm107_vm0, %v3148_v36 }
  0x47   :  { %2468 = vmatprep.mubr.msk.f32.mxu0 %vm107_vm0, %v3153_v37 }
  0x4a   :  { %2469 = vmatmul.mubr.msk.f32.gmra.mrb[30].mxu0 %vm107_vm0, %v3162_v38 }
  0x4b   :  { %2471 = vmatprep.mubr.msk.f32.mxu0 %vm107_vm0, %v3167_v39 }
  0x4e   :  { %2472 = vmatmul.mubr.msk.f32.gmra.mrb[32].mxu0 %vm107_vm0, %v3176_v40 }
  0x4f   :  { %2474 = vmatprep.mubr.msk.f32.mxu0 %vm107_vm0, %v3181_v41 }
  0x52   :  { %2475 = vmatmul.mubr.msk.f32.gmra.mrb[34].mxu0 %vm107_vm0, %v3190_v42 }
  0x53   :  { %2477 = vmatprep.mubr.msk.f32.mxu0 %vm107_vm0, %v3195_v43 }
  0x56   :  { %2478 = vmatmul.mubr.msk.f32.gmra.mrb[36].mxu0 %vm107_vm0, %v3204_v44 }
  0x57   :  { %2480 = vmatprep.mubr.msk.f32.mxu0 %vm107_vm0, %v3209_v45 }
  0x5a   :  { %2481 = vmatmul.mubr.msk.f32.gmra.mrb[38].mxu0 %vm107_vm0, %v3218_v46 }
  0x5b   :  { %2483 = vmatprep.mubr.msk.f32.mxu0 %vm107_vm0, %v3223_v47 }
  0x5e   :  { %2484 = vmatmul.mubr.msk.f32.gmra.mrb[40].mxu0 %vm107_vm0, %v3232_v48 }
  0x5f   :  { %2486 = vmatprep.mubr.msk.f32.mxu0 %vm107_vm0, %v3237_v49 }
  0x62   :  { %2487 = vmatmul.mubr.msk.f32.gmra.mrb[42].mxu0 %vm107_vm0, %v3246_v50 }
  0x63   :  { %2489 = vmatprep.mubr.msk.f32.mxu0 %vm107_vm0, %v3251_v51 }
  0x66   :  { %2490 = vmatmul.mubr.msk.f32.gmra.mrb[44].mxu0 %vm107_vm0, %v3260_v52 }
  0x67   :  { %2492 = vmatprep.mubr.msk.f32.mxu0 %vm107_vm0, %v3265_v53 }
  0x6a   :  { %2493 = vmatmul.mubr.msk.f32.gmra.mrb[46].mxu0 %vm107_vm0, %v3274_v54 }
  0x6b   :  { %2495 = vmatprep.mubr.msk.f32.mxu0 %vm107_vm0, %v3279_v55 }
  0x6e   :  { %2496 = vmatmul.mubr.msk.f32.gmra.mrb[48].mxu0 %vm107_vm0, %v3288_v56 }
  0x6f   :  { %2498 = vmatprep.mubr.msk.f32.mxu0 %vm107_vm0, %v3293_v57 }
  0x72   :  { %2499 = vmatmul.mubr.msk.f32.gmra.mrb[50].mxu0 %vm107_vm0, %v3302_v58 }
  0x73   :  { %2501 = vmatprep.mubr.msk.f32.mxu0 %vm107_vm0, %v3307_v59 }
  0x76   :  { %2502 = vmatmul.mubr.msk.f32.gmra.mrb[52].mxu0 %vm107_vm0, %v3316_v60 }
  0x77   :  { %2504 = vmatprep.mubr.msk.f32.mxu0 %vm107_vm0, %v3321_v61 }
  0x7a   :  { %2505 = vmatmul.mubr.msk.f32.gmra.mrb[54].mxu0 %vm107_vm0, %v3330_v62 }
  0x7b   :  { %2507 = vmatprep.mubr.msk.f32.mxu0 %vm107_vm0, %v3335_v63 }
  0x7e   :  { %2508 = vmatmul.mubr.msk.f32.gmra.mrb[56].mxu0 %vm107_vm0, %v3344_v0  ;;  %v101_v0 = vld [vmem:[%s4029_s1] sm:$0xff] }
  0x7f   :  { %2510 = vmatprep.mubr.msk.f32.mxu0 %vm107_vm0, %v3349_v1 }
  0x82   :  { %2511 = vmatmul.mubr.msk.f32.gmra.mrb[58].mxu0 %vm107_vm0, %v3358_v2 }
  0x83   :  { %2513 = vmatprep.mubr.msk.f32.mxu0 %vm107_vm0, %v3363_v3 }
  0x86   :  { %2514 = vmatmul.mubr.msk.f32.gmra.mrb[60].mxu0 %vm107_vm0, %v3372_v4  ;;  %v2885_v4 = vmov 1983009808  }
  0x87   :  { %2516 = vmatprep.mubr.msk.f32.mxu0 %vm107_vm0, %v3377_v5  ;;  %v3402_v5 = vsub.s32 0, %v700_v14  ;;  %v905_v3 = vunpack.c.l.s4 %v2885_v4 }
  0x89   :  { %4085 = vst [vmem:[#allocation30_spill] sm:$0xff] %v3402_v5  ;;  %v3405_v8 = vrot.slane %v693_v12, %v3402_v5  ;;  %v906_v2 = vunpack.c.0.s8 %v905_v3 }
  0x8a   :  { %2517 = vmatmul.mubr.msk.f32.gmra.mrb[62].mxu0 %vm107_vm0, %v3386_v6  ;;  %v694_v6 = vld [vmem:[%s4032_s4] sm:$0x1] }
  0x8b   :  { %v697_v7 = vsub.f32 %v694_v6, %v696_v15  ;;  %v909_v6 = vsub.s32 %v906_v2, %v700_v14  ;;  %v903_v15 = vcombine.high %v101_v0, %v101_v0 }
  0x8d   :  { %v3408_v9 = vrot.slane %v697_v7, %v3402_v5  ;;  %v3417_v7 = vrot.slane %v101_v0, %v909_v6  ;;  %v3420_v62 = vrot.slane %v903_v15, %v909_v6 }
  0x8f   :  { %v3425_v2 = vcombine.high %v3417_v7, %v3417_v7 }
  0x91   :  { %4086 = vst [vmem:[#allocation31_spill] sm:$0xff] %v3425_v2  ;;  %988 = vmatprep.mubr.f32.mxu0 %v3425_v2 }
  0xe1   :  { %v2425_v10 = vpop.f32.mrb[0].mxu0 }
  0xe2   :  { %v705_v11 = vmul.f32 %v2425_v10, %v3405_v8  ;;  %v370_v13 = vpop.f32.mrb[1].mxu0 }
  0xe3   :  { %v704_v1 = vmul.f32 %v3405_v8, %v370_v13 }
  0xe4   :  { %v775_v12 = vadd.f32 %v3408_v9, %v705_v11 }
  0xe5   :  { %v774_v4 = vadd.f32 %v3408_v9, %v704_v1  ;;  %v2428_v63 = vpop.f32.mrb[2].mxu0  ;;  %v3430_v1 = vcombine.high %v3420_v62, %v3420_v62 }
  0xe6   :  { %v839_v5 = vmax.f32 %v775_v12, 0.0  ;;  %v707_v3 = vmul.f32 %v2428_v63, %v3405_v8  ;;  %v380_v10 = vpop.f32.mrb[3].mxu0 }
  0xe7   :  { %v838_v13 = vmax.f32 %v774_v4, 0.0  ;;  %v706_v61 = vmul.f32 %v3405_v8, %v380_v10  ;;  %1058 = vmatprep.mubr.f32.mxu1 %v3430_v1 }
  0xe8   :  { %v777_v14 = vadd.f32 %v3408_v9, %v707_v3 }
  0xe9   :  { %v3432_v0 = vpack.c.bf16 %v839_v5, %v838_v13  ;;  %v776_v63 = vadd.f32 %v3408_v9, %v706_v61  ;;  %v2431_v11 = vpop.f32.mrb[4].mxu0 }
  0xea   :  { %v841_v6 = vmax.f32 %v777_v14, 0.0  ;;  %v709_v12 = vmul.f32 %v2431_v11, %v3405_v8  ;;  %v390_v15 = vpop.f32.mrb[5].mxu0 }
  0xeb   :  { %v840_v4 = vmax.f32 %v776_v63, 0.0  ;;  %v708_v3 = vmul.f32 %v3405_v8, %v390_v15 }
  0xec   :  { %v779_v10 = vadd.f32 %v3408_v9, %v709_v12 }
  0xed   :  { %v3440_v60 = vpack.c.bf16 %v841_v6, %v840_v4  ;;  %v778_v5 = vadd.f32 %v3408_v9, %v708_v3  ;;  %v2434_v13 = vpop.f32.mrb[6].mxu0 }
  0xee   :  { %v843_v61 = vmax.f32 %v779_v10, 0.0  ;;  %v711_v59 = vmul.f32 %v2434_v13, %v3405_v8  ;;  %v400_v2 = vpop.f32.mrb[7].mxu0 }
  0xef   :  { %v842_v14 = vmax.f32 %v778_v5, 0.0  ;;  %v710_v11 = vmul.f32 %v3405_v8, %v400_v2 }
  0xf0   :  { %v781_v58 = vadd.f32 %v3408_v9, %v711_v59 }
  0xf1   :  { %v3446_v57 = vpack.c.bf16 %v843_v61, %v842_v14  ;;  %v780_v63 = vadd.f32 %v3408_v9, %v710_v11  ;;  %v2437_v15 = vpop.f32.mrb[8].mxu0 }
  0xf2   :  { %v845_v12 = vmax.f32 %v781_v58, 0.0  ;;  %v713_v6 = vmul.f32 %v2437_v15, %v3405_v8  ;;  %v410_v4 = vpop.f32.mrb[9].mxu0 }
  0xf3   :  { %v844_v3 = vmax.f32 %v780_v63, 0.0  ;;  %v712_v10 = vmul.f32 %v3405_v8, %v410_v4 }
  0xf4   :  { %v783_v13 = vadd.f32 %v3408_v9, %v713_v6 }
  0xf5   :  { %v3452_v56 = vpack.c.bf16 %v845_v12, %v844_v3  ;;  %v782_v2 = vadd.f32 %v3408_v9, %v712_v10  ;;  %v2440_v5 = vpop.f32.mrb[10].mxu0 }
  0xf6   :  { %v847_v59 = vmax.f32 %v783_v13, 0.0  ;;  %v715_v61 = vmul.f32 %v2440_v5, %v3405_v8  ;;  %v420_v14 = vpop.f32.mrb[11].mxu0 }
  0xf7   :  { %v846_v11 = vmax.f32 %v782_v2, 0.0  ;;  %v714_v58 = vmul.f32 %v3405_v8, %v420_v14 }
  0xf8   :  { %v785_v15 = vadd.f32 %v3408_v9, %v715_v61 }
  0xf9   :  { %v3458_v55 = vpack.c.bf16 %v847_v59, %v846_v11  ;;  %v784_v63 = vadd.f32 %v3408_v9, %v714_v58  ;;  %v2443_v4 = vpop.f32.mrb[12].mxu0 }
  0xfa   :  { %v849_v6 = vmax.f32 %v785_v15, 0.0  ;;  %v717_v12 = vmul.f32 %v2443_v4, %v3405_v8  ;;  %v430_v3 = vpop.f32.mrb[13].mxu0 }
  0xfb   :  { %v848_v10 = vmax.f32 %v784_v63, 0.0  ;;  %v716_v13 = vmul.f32 %v3405_v8, %v430_v3 }
  0xfc   :  { %v787_v5 = vadd.f32 %v3408_v9, %v717_v12 }
  0xfd   :  { %v3464_v54 = vpack.c.bf16 %v849_v6, %v848_v10  ;;  %v786_v2 = vadd.f32 %v3408_v9, %v716_v13  ;;  %v2446_v14 = vpop.f32.mrb[14].mxu0 }
  0xfe   :  { %v851_v61 = vmax.f32 %v787_v5, 0.0  ;;  %v719_v59 = vmul.f32 %v2446_v14, %v3405_v8  ;;  %v440_v11 = vpop.f32.mrb[15].mxu0 }
  0xff   :  { %v850_v58 = vmax.f32 %v786_v2, 0.0  ;;  %v718_v15 = vmul.f32 %v3405_v8, %v440_v11 }
 0x100   :  { %v789_v4 = vadd.f32 %v3408_v9, %v719_v59 }
 0x101   :  { %v3470_v53 = vpack.c.bf16 %v851_v61, %v850_v58  ;;  %v788_v63 = vadd.f32 %v3408_v9, %v718_v15  ;;  %v2449_v3 = vpop.f32.mrb[16].mxu0 }
 0x102   :  { %v853_v12 = vmax.f32 %v789_v4, 0.0  ;;  %v721_v6 = vmul.f32 %v2449_v3, %v3405_v8  ;;  %v450_v10 = vpop.f32.mrb[17].mxu0 }
 0x103   :  { %v852_v13 = vmax.f32 %v788_v63, 0.0  ;;  %v720_v5 = vmul.f32 %v3405_v8, %v450_v10 }
 0x104   :  { %v791_v14 = vadd.f32 %v3408_v9, %v721_v6 }
 0x105   :  { %v3476_v52 = vpack.c.bf16 %v853_v12, %v852_v13  ;;  %v790_v2 = vadd.f32 %v3408_v9, %v720_v5  ;;  %v2452_v11 = vpop.f32.mrb[18].mxu0 }
 0x106   :  { %v855_v59 = vmax.f32 %v791_v14, 0.0  ;;  %v723_v61 = vmul.f32 %v2452_v11, %v3405_v8  ;;  %v460_v58 = vpop.f32.mrb[19].mxu0 }
 0x107   :  { %v854_v15 = vmax.f32 %v790_v2, 0.0  ;;  %v722_v4 = vmul.f32 %v3405_v8, %v460_v58 }
 0x108   :  { %v793_v3 = vadd.f32 %v3408_v9, %v723_v61 }
 0x109   :  { %v792_v63 = vadd.f32 %v3408_v9, %v722_v4  ;;  %v2455_v51 = vpop.f32.mrb[20].mxu0  ;;  %v2644_v10 = vpack.c.bf16 %v855_v59, %v854_v15 }
 0x10a   :  { %v857_v50 = vmax.f32 %v793_v3, 0.0  ;;  %v725_v12 = vmul.f32 %v2455_v51, %v3405_v8  ;;  %v470_v6 = vpop.f32.mrb[21].mxu0 }
 0x10b   :  { %v856_v13 = vmax.f32 %v792_v63, 0.0  ;;  %v724_v5 = vmul.f32 %v3405_v8, %v470_v6  ;;  %2645 = vmatprep.subr.bf16.mxu0 %v2644_v10 }
 0x10c   :  { %v795_v14 = vadd.f32 %v3408_v9, %v725_v12  ;;  %2647 = vmatpush3.bf16.msra.mxu0 %v3432_v0 }
 0x10d   :  { %v794_v2 = vadd.f32 %v3408_v9, %v724_v5  ;;  %v2458_v11 = vpop.f32.mrb[22].mxu0  ;;  %v2648_v61 = vpack.c.bf16 %v857_v50, %v856_v13 }
 0x10e   :  { %v859_v58 = vmax.f32 %v795_v14, 0.0  ;;  %v727_v4 = vmul.f32 %v2458_v11, %v3405_v8  ;;  %v480_v59 = vpop.f32.mrb[23].mxu0 }
 0x10f   :  { %v858_v15 = vmax.f32 %v794_v2, 0.0  ;;  %v726_v51 = vmul.f32 %v3405_v8, %v480_v59  ;;  %2649 = vmatprep.subr.bf16.mxu0 %v2648_v61 }
 0x110   :  { %v797_v3 = vadd.f32 %v3408_v9, %v727_v4  ;;  %2651 = vmatpush3.bf16.msra.mxu0 %v3440_v60 }
 0x111   :  { %v796_v63 = vadd.f32 %v3408_v9, %v726_v51  ;;  %v2461_v10 = vpop.f32.mrb[24].mxu0  ;;  %v2652_v0 = vpack.c.bf16 %v859_v58, %v858_v15 }
 0x112   :  { %v861_v12 = vmax.f32 %v797_v3, 0.0  ;;  %v729_v6 = vmul.f32 %v2461_v10, %v3405_v8  ;;  %v490_v50 = vpop.f32.mrb[25].mxu0 }
 0x113   :  { %v860_v13 = vmax.f32 %v796_v63, 0.0  ;;  %v728_v5 = vmul.f32 %v3405_v8, %v490_v50  ;;  %2653 = vmatprep.subr.bf16.mxu0 %v2652_v0 }
 0x114   :  { %v799_v14 = vadd.f32 %v3408_v9, %v729_v6  ;;  %2655 = vmatpush3.bf16.msra.mxu0 %v3446_v57 }
 0x115   :  { %v798_v2 = vadd.f32 %v3408_v9, %v728_v5  ;;  %v2464_v11 = vpop.f32.mrb[26].mxu0  ;;  %v2656_v60 = vpack.c.bf16 %v861_v12, %v860_v13 }
 0x116   :  { %v863_v61 = vmax.f32 %v799_v14, 0.0  ;;  %v731_v4 = vmul.f32 %v2464_v11, %v3405_v8  ;;  %v500_v58 = vpop.f32.mrb[27].mxu0 }
 0x117   :  { %v862_v59 = vmax.f32 %v798_v2, 0.0  ;;  %v730_v15 = vmul.f32 %v3405_v8, %v500_v58  ;;  %2657 = vmatprep.subr.bf16.mxu0 %v2656_v60 }
 0x118   :  { %v801_v51 = vadd.f32 %v3408_v9, %v731_v4  ;;  %2659 = vmatpush3.bf16.msra.mxu0 %v3452_v56 }
 0x119   :  { %v800_v3 = vadd.f32 %v3408_v9, %v730_v15  ;;  %v2467_v63 = vpop.f32.mrb[28].mxu0  ;;  %v2660_v57 = vpack.c.bf16 %v863_v61, %v862_v59 }
 0x11a   :  { %v865_v10 = vmax.f32 %v801_v51, 0.0  ;;  %v733_v0 = vmul.f32 %v2467_v63, %v3405_v8  ;;  %v510_v12 = vpop.f32.mrb[29].mxu0 }
 0x11b   :  { %v864_v6 = vmax.f32 %v800_v3, 0.0  ;;  %v732_v50 = vmul.f32 %v3405_v8, %v510_v12  ;;  %2661 = vmatprep.subr.bf16.mxu0 %v2660_v57 }
 0x11c   :  { %v803_v13 = vadd.f32 %v3408_v9, %v733_v0  ;;  %2663 = vmatpush3.bf16.msra.mxu0 %v3458_v55 }
 0x11d   :  { %v802_v5 = vadd.f32 %v3408_v9, %v732_v50  ;;  %v2470_v14 = vpop.f32.mrb[30].mxu0  ;;  %v2664_v56 = vpack.c.bf16 %v865_v10, %v864_v6 }
 0x11e   :  { %v867_v2 = vmax.f32 %v803_v13, 0.0  ;;  %v735_v11 = vmul.f32 %v2470_v14, %v3405_v8  ;;  %v520_v60 = vpop.f32.mrb[31].mxu0 }
 0x11f   :  { %v866_v61 = vmax.f32 %v802_v5, 0.0  ;;  %v734_v4 = vmul.f32 %v3405_v8, %v520_v60  ;;  %2665 = vmatprep.subr.bf16.mxu0 %v2664_v56 }
 0x120   :  { %v805_v58 = vadd.f32 %v3408_v9, %v735_v11  ;;  %2667 = vmatpush3.bf16.msra.mxu0 %v3464_v54 }
 0x121   :  { %v804_v59 = vadd.f32 %v3408_v9, %v734_v4  ;;  %v2473_v15 = vpop.f32.mrb[32].mxu0  ;;  %v2668_v55 = vpack.c.bf16 %v867_v2, %v866_v61 }
 0x122   :  { %v869_v51 = vmax.f32 %v805_v58, 0.0  ;;  %v737_v3 = vmul.f32 %v2473_v15, %v3405_v8  ;;  %v530_v63 = vpop.f32.mrb[33].mxu0 }
 0x123   :  { %v868_v57 = vmax.f32 %v804_v59, 0.0  ;;  %v736_v10 = vmul.f32 %v3405_v8, %v530_v63  ;;  %2669 = vmatprep.subr.bf16.mxu0 %v2668_v55 }
 0x124   :  { %v807_v0 = vadd.f32 %v3408_v9, %v737_v3  ;;  %2671 = vmatpush3.bf16.msra.mxu0 %v3470_v53 }
 0x125   :  { %v806_v12 = vadd.f32 %v3408_v9, %v736_v10  ;;  %v2476_v6 = vpop.f32.mrb[34].mxu0  ;;  %v2672_v54 = vpack.c.bf16 %v869_v51, %v868_v57 }
 0x126   :  { %v871_v50 = vmax.f32 %v807_v0, 0.0  ;;  %v739_v13 = vmul.f32 %v2476_v6, %v3405_v8  ;;  %v540_v5 = vpop.f32.mrb[35].mxu0 }
 0x127   :  { %v870_v14 = vmax.f32 %v806_v12, 0.0  ;;  %v738_v56 = vmul.f32 %v3405_v8, %v540_v5  ;;  %2673 = vmatprep.subr.bf16.mxu0 %v2672_v54 }
 0x128   :  { %v809_v2 = vadd.f32 %v3408_v9, %v739_v13  ;;  %2675 = vmatpush3.bf16.msra.mxu0 %v3476_v52 }
 0x129   :  { %v808_v11 = vadd.f32 %v3408_v9, %v738_v56  ;;  %v2479_v60 = vpop.f32.mrb[36].mxu0  ;;  %v3523_v53 = vpack.c.bf16 %v871_v50, %v870_v14 }
 0x12a   :  { %v873_v61 = vmax.f32 %v809_v2, 0.0  ;;  %v741_v4 = vmul.f32 %v2479_v60, %v3405_v8  ;;  %v550_v58 = vpop.f32.mrb[37].mxu0 }
 0x12b   :  { %v872_v59 = vmax.f32 %v808_v11, 0.0  ;;  %v740_v15 = vmul.f32 %v3405_v8, %v550_v58  ;;  %989 = vmatmul.mubr.f32.vlgmr.msra.gmra.mrb[64].mxu0 %v3417_v7 }
 0x12c   :  { %v811_v55 = vadd.f32 %v3408_v9, %v741_v4  ;;  %1894 = vmatprep.mubr.f32.mxu0 %v3430_v1 }
 0x12d   :  { %v810_v52 = vadd.f32 %v3408_v9, %v740_v15  ;;  %v2482_v51 = vpop.f32.mrb[38].mxu0  ;;  %v3531_v3 = vpack.c.bf16 %v873_v61, %v872_v59 }
 0x12e   :  { %v875_v63 = vmax.f32 %v811_v55, 0.0  ;;  %v743_v57 = vmul.f32 %v2482_v51, %v3405_v8  ;;  %v560_v10 = vpop.f32.mrb[39].mxu0 }
 0x12f   :  { %v874_v0 = vmax.f32 %v810_v52, 0.0  ;;  %v742_v12 = vmul.f32 %v3405_v8, %v560_v10 }
 0x130   :  { %v813_v6 = vadd.f32 %v3408_v9, %v743_v57 }
 0x131   :  { %v812_v54 = vadd.f32 %v3408_v9, %v742_v12  ;;  %v2485_v50 = vpop.f32.mrb[40].mxu0  ;;  %v3537_v13 = vpack.c.bf16 %v875_v63, %v874_v0 }
 0x132   :  { %v877_v1 = vmax.f32 %v813_v6, 0.0  ;;  %v745_v5 = vmul.f32 %v2485_v50, %v3405_v8  ;;  %v570_v14 = vpop.f32.mrb[41].mxu0 }
 0x133   :  { %v876_v56 = vmax.f32 %v812_v54, 0.0  ;;  %v744_v2 = vmul.f32 %v3405_v8, %v570_v14 }
 0x134   :  { %v815_v11 = vadd.f32 %v3408_v9, %v745_v5 }
 0x135   :  { %v814_v60 = vadd.f32 %v3408_v9, %v744_v2  ;;  %v2488_v61 = vpop.f32.mrb[42].mxu0  ;;  %v3543_v4 = vpack.c.bf16 %v877_v1, %v876_v56 }
 0x136   :  { %v879_v58 = vmax.f32 %v815_v11, 0.0  ;;  %v747_v59 = vmul.f32 %v2488_v61, %v3405_v8  ;;  %v580_v15 = vpop.f32.mrb[43].mxu0 }
 0x137   :  { %v878_v55 = vmax.f32 %v814_v60, 0.0  ;;  %v746_v52 = vmul.f32 %v3405_v8, %v580_v15 }
 0x138   :  { %v817_v51 = vadd.f32 %v3408_v9, %v747_v59 }
 0x139   :  { %v816_v63 = vadd.f32 %v3408_v9, %v746_v52  ;;  %v2491_v57 = vpop.f32.mrb[44].mxu0  ;;  %v3549_v10 = vpack.c.bf16 %v879_v58, %v878_v55 }
 0x13a   :  { %v881_v0 = vmax.f32 %v817_v51, 0.0  ;;  %v749_v12 = vmul.f32 %v2491_v57, %v3405_v8  ;;  %v590_v6 = vpop.f32.mrb[45].mxu0 }
 0x13b   :  { %v880_v54 = vmax.f32 %v816_v63, 0.0  ;;  %v748_v50 = vmul.f32 %v3405_v8, %v590_v6 }
 0x13c   :  { %v819_v1 = vadd.f32 %v3408_v9, %v749_v12 }
 0x13d   :  { %v818_v5 = vadd.f32 %v3408_v9, %v748_v50  ;;  %v2494_v14 = vpop.f32.mrb[46].mxu0  ;;  %v3555_v56 = vpack.c.bf16 %v881_v0, %v880_v54 }
 0x13e   :  { %v883_v2 = vmax.f32 %v819_v1, 0.0  ;;  %v751_v11 = vmul.f32 %v2494_v14, %v3405_v8  ;;  %v600_v60 = vpop.f32.mrb[47].mxu0 }
 0x13f   :  { %v882_v61 = vmax.f32 %v818_v5, 0.0  ;;  %v750_v58 = vmul.f32 %v3405_v8, %v600_v60 }
 0x140   :  { %v821_v59 = vadd.f32 %v3408_v9, %v751_v11 }
 0x141   :  { %v820_v15 = vadd.f32 %v3408_v9, %v750_v58  ;;  %v2497_v55 = vpop.f32.mrb[48].mxu0  ;;  %v3561_v52 = vpack.c.bf16 %v883_v2, %v882_v61 }
 0x142   :  { %v885_v51 = vmax.f32 %v821_v59, 0.0  ;;  %v753_v63 = vmul.f32 %v2497_v55, %v3405_v8  ;;  %v610_v57 = vpop.f32.mrb[49].mxu0 }
 0x143   :  { %v884_v0 = vmax.f32 %v820_v15, 0.0  ;;  %v752_v12 = vmul.f32 %v3405_v8, %v610_v57 }
 0x144   :  { %v823_v6 = vadd.f32 %v3408_v9, %v753_v63 }
 0x145   :  { %v2500_v54 = vpop.f32.mrb[50].mxu0  ;;  %v822_v50 = vadd.f32 %v3408_v9, %v752_v12  ;;  %v3567_v1 = vpack.c.bf16 %v885_v51, %v884_v0 }
 0x146   :  { %v755_v5 = vmul.f32 %v2500_v54, %v3405_v8  ;;  %v620_v14 = vpop.f32.mrb[51].mxu0  ;;  %v887_v11 = vmax.f32 %v823_v6, 0.0 }
 0x147   :  { %v754_v2 = vmul.f32 %v3405_v8, %v620_v14  ;;  %v886_v60 = vmax.f32 %v822_v50, 0.0 }
 0x148   :  { %v825_v61 = vadd.f32 %v3408_v9, %v755_v5 }
 0x149   :  { %v824_v58 = vadd.f32 %v3408_v9, %v754_v2  ;;  %v2503_v59 = vpop.f32.mrb[52].mxu0  ;;  %v2676_v15 = vpack.c.bf16 %v887_v11, %v886_v60 }
 0x14a   :  { %v889_v55 = vmax.f32 %v825_v61, 0.0  ;;  %v757_v63 = vmul.f32 %v2503_v59, %v3405_v8  ;;  %v630_v57 = vpop.f32.mrb[53].mxu0 }
 0x14b   :  { %v888_v12 = vmax.f32 %v824_v58, 0.0  ;;  %v756_v51 = vmul.f32 %v3405_v8, %v630_v57  ;;  %2677 = vmatprep.subr.bf16.mxu1 %v2676_v15 }
 0x14c   :  { %v827_v0 = vadd.f32 %v3408_v9, %v757_v63  ;;  %2679 = vmatpush3.bf16.msra.mxu1 %v3523_v53 }
 0x14d   :  { %v826_v6 = vadd.f32 %v3408_v9, %v756_v51  ;;  %v2506_v54 = vpop.f32.mrb[54].mxu0  ;;  %v2680_v50 = vpack.c.bf16 %v889_v55, %v888_v12 }
 0x14e   :  { %v891_v5 = vmax.f32 %v827_v0, 0.0  ;;  %v759_v14 = vmul.f32 %v2506_v54, %v3405_v8  ;;  %v640_v11 = vpop.f32.mrb[55].mxu0 }
 0x14f   :  { %v890_v2 = vmax.f32 %v826_v6, 0.0  ;;  %v758_v60 = vmul.f32 %v3405_v8, %v640_v11  ;;  %2681 = vmatprep.subr.bf16.mxu1 %v2680_v50 }
 0x150   :  { %v829_v61 = vadd.f32 %v3408_v9, %v759_v14  ;;  %2683 = vmatpush3.bf16.msra.mxu1 %v3531_v3 }
 0x151   :  { %v828_v58 = vadd.f32 %v3408_v9, %v758_v60  ;;  %v2509_v59 = vpop.f32.mrb[56].mxu0  ;;  %v2684_v53 = vpack.c.bf16 %v891_v5, %v890_v2 }
 0x152   :  { %v893_v15 = vmax.f32 %v829_v61, 0.0  ;;  %v761_v63 = vmul.f32 %v2509_v59, %v3405_v8  ;;  %v650_v55 = vpop.f32.mrb[57].mxu0 }
 0x153   :  { %v892_v57 = vmax.f32 %v828_v58, 0.0  ;;  %v760_v12 = vmul.f32 %v3405_v8, %v650_v55  ;;  %2685 = vmatprep.subr.bf16.mxu1 %v2684_v53 }
 0x154   :  { %v831_v51 = vadd.f32 %v3408_v9, %v761_v63  ;;  %2687 = vmatpush3.bf16.msra.mxu1 %v3537_v13 }
 0x155   :  { %v830_v0 = vadd.f32 %v3408_v9, %v760_v12  ;;  %v2512_v6 = vpop.f32.mrb[58].mxu0  ;;  %v2688_v3 = vpack.c.bf16 %v893_v15, %v892_v57 }
 0x156   :  { %v895_v54 = vmax.f32 %v831_v51, 0.0  ;;  %v763_v50 = vmul.f32 %v2512_v6, %v3405_v8  ;;  %v660_v5 = vpop.f32.mrb[59].mxu0 }
 0x157   :  { %v894_v14 = vmax.f32 %v830_v0, 0.0  ;;  %v762_v11 = vmul.f32 %v3405_v8, %v660_v5  ;;  %2689 = vmatprep.subr.bf16.mxu1 %v2688_v3 }
 0x158   :  { %v833_v2 = vadd.f32 %v3408_v9, %v763_v50  ;;  %2691 = vmatpush3.bf16.msra.mxu1 %v3543_v4 }
 0x159   :  { %v832_v60 = vadd.f32 %v3408_v9, %v762_v11  ;;  %v2515_v61 = vpop.f32.mrb[60].mxu0  ;;  %v2692_v13 = vpack.c.bf16 %v895_v54, %v894_v14 }
 0x15a   :  { %v897_v58 = vmax.f32 %v833_v2, 0.0  ;;  %v765_v59 = vmul.f32 %v2515_v61, %v3405_v8  ;;  %v670_v53 = vpop.f32.mrb[61].mxu0  ;;  %v1067_v61 = vld [vmem:[%s4035_s7 + $0x18] sm:$0xff] }
 0x15b   :  { %v896_v15 = vmax.f32 %v832_v60, 0.0  ;;  %v764_v63 = vmul.f32 %v3405_v8, %v670_v53  ;;  %2693 = vmatprep.subr.bf16.mxu1 %v2692_v13  ;;  %v1064_v60 = vld [vmem:[%s4035_s7] sm:$0xff]  ;;  %v2888_v53 = vmov 0.0  }
 0x15c   :  { %v835_v55 = vadd.f32 %v3408_v9, %v765_v59  ;;  %2695 = vmatpush3.bf16.msra.mxu1 %v3549_v10 }
 0x15d   :  { %v834_v57 = vadd.f32 %v3408_v9, %v764_v63  ;;  %v2518_v12 = vpop.f32.mrb[62].mxu0  ;;  %v2696_v4 = vpack.c.bf16 %v897_v58, %v896_v15  ;;  %v2057_v58 = vld [vmem:[%s4030_s2 + $0x30] sm:$0xff] }
 0x15e   :  { %v899_v51 = vmax.f32 %v835_v55, 0.0  ;;  %v767_v0 = vmul.f32 %v2518_v12, %v3405_v8  ;;  %v680_v6 = vpop.f32.mrb[63].mxu0 }
 0x15f   :  { %v898_v3 = vmax.f32 %v834_v57, 0.0  ;;  %v766_v54 = vmul.f32 %v3405_v8, %v680_v6  ;;  %2697 = vmatprep.subr.bf16.mxu1 %v2696_v4  ;;  %v1065_v8 = vld [vmem:[%s4035_s7 + $0x8] sm:$0xff]  ;;  %v2058_v4 = vld [vmem:[%s4030_s2 + $0x38] sm:$0xff] }
 0x160   :  { %v837_v50 = vadd.f32 %v3408_v9, %v767_v0  ;;  %2699 = vmatpush3.bf16.msra.mxu1 %v3555_v56  ;;  %v2709_v56 = vpack.c.bf16 %v1065_v8, %v1064_v60  ;;  %v2810_v60 = vld [vmem:[%s4028_s0 + $0x20] sm:$0xff]  ;;  %v2811_v8 = vld [vmem:[%s4028_s0 + $0x28] sm:$0xff] }
 0x161   :  { %v836_v5 = vadd.f32 %v3408_v9, %v766_v54  ;;  %v2700_v14 = vpack.c.bf16 %v899_v51, %v898_v3  ;;  %v2886_v9 = vmov 0.0|0.0   ;;  %v2059_v51 = vld [vmem:[%s4030_s2 + $0x40] sm:$0xff] }
 0x162   :  { %v901_v10 = vmax.f32 %v837_v50, 0.0  ;;  %v2718_v3 = vpack.c.bf16 %v2059_v51, %v2058_v4  ;;  %v2806_v50 = vld [vmem:[%s4028_s0] sm:$0xff] }
 0x163   :  { %v900_v11 = vmax.f32 %v836_v5, 0.0  ;;  %2701 = vmatprep.subr.bf16.mxu1 %v2700_v14  ;;  %v2060_v14 = vld [vmem:[%s4030_s2 + $0x48] sm:$0xf] }
 0x164   :  { %2703 = vmatpush3.bf16.msra.mxu1 %v3561_v52  ;;  %v1066_v52 = vld [vmem:[%s4035_s7 + $0x10] sm:$0xff] }
 0x165   :  { %v2704_v2 = vpack.c.bf16 %v901_v10, %v900_v11  ;;  %v2712_v13 = vpack.c.bf16 %v1067_v61, %v1066_v52  ;;  %v2807_v10 = vld [vmem:[%s4028_s0 + $0x8] sm:$0xff]  ;;  %v2808_v11 = vld [vmem:[%s4028_s0 + $0x10] sm:$0xff]  ;;  %v2814_v52 = vld [vmem:[%s4028_s0 + $0x40] sm:$0xff] }
 0x167   :  { %2705 = vmatprep.subr.bf16.mxu1 %v2704_v2  ;;  %v2809_v2 = vld [vmem:[%s4028_s0 + $0x18] sm:$0xff] }
 0x168   :  { %2707 = vmatpush3.bf16.msra.mxu1 %v3567_v1  ;;  %v2056_v1 = vld [vmem:[%s4030_s2 + $0x28] sm:$0xff] }
 0x169   :  { %2708 = vmatprep.subr.bf16.mxu1 %v2886_v9  ;;  %v2714_v59 = vpack.c.bf16 %v2057_v58, %v2056_v1 }
 0x16b   :  { %1059 = vmatmul.mubr.f32.vlgmr.msra.gmra.mrb[0].mxu1 %v3420_v62 }
 0x16c   :  { %2710 = vmatpush3.bf16.msra.mxu1 %v2709_v56  ;;  %2527 = vmatprep.mubr.msk.f32.mxu1 %vm2887_vm2, %v2888_v53  ;;  %v2812_v56 = vld [vmem:[%s4028_s0 + $0x30] sm:$0xff] }
 0x16d   :  { %2711 = vmatprep.subr.bf16.mxu1 %v2886_v9  ;;  %v2813_v9 = vld [vmem:[%s4028_s0 + $0x38] sm:$0xff] }
 0x170   :  { %2713 = vmatpush3.bf16.msra.mxu1 %v2712_v13  ;;  %v4109_v13 = vld [vmem:[#allocation30_spill] sm:$0xff] }
 0x171   :  { %2715 = vmatprep.subr.bf16.mxu1 %v2714_v59 }
 0x1fe   :  { %v2231_v15 = vpop.f32.mrb[64].mxu0 }
 0x1ff   :  { %v2232_v63 = vpop.f32.mrb[65].mxu0 }
 0x200   :  { %v2233_v55 = vadd.f32 %v2232_v63, %v2231_v15 }
 0x23e   :  { %v2266_v57 = vpop.f32.mrb[0].mxu1 }
 0x23f   :  { %v2267_v12 = vpop.f32.mrb[1].mxu1 }
 0x240   :  { %v2268_v0 = vadd.f32 %v2267_v12, %v2266_v57 }
 0x242   :  { %v3630_v6 = vadd.f32 %v2268_v0, %v2233_v55 }
 0x244   :  { %2528 = vmatmul.mubr.msk.f32.vlgmr.msra.gmra.mrb[2].mxu1 %vm1075_vm3, %v3630_v6  ;;  %v1900_v54 = vmul.f32 %v3630_v6, %v3630_v6  ;;  %1945 = vst.msk [vmem:[#allocation4] sm:$0x3] %vm1901_vm4, %v3630_v6 }
 0x245   :  { %2717 = vmatpush3.bf16.msra.mxu1 %v2714_v59  ;;  %2540 = vmatprep.mubr.msk.f32.mxu1 %vm107_vm0, %v2806_v50 }
 0x246   :  { %v1902_v5 = vsel %vm1901_vm4, %v1900_v54, 0.0  ;;  %2719 = vmatprep.subr.bf16.mxu1 %v2718_v3 }
 0x247   :  { %1903 = vadd.xlane.f32.xlu0 %v1902_v5 }
 0x249   :  { %2721 = vmatpush3.bf16.msra.mxu1 %v2718_v3 }
 0x24a   :  { %2538 = vmatprep.subr.msk.mxu1 %vm300_vm1, %v2060_v14 }
 0x24d   :  { %2539 = vmatpush3.msk.msra.mxu1 %vm300_vm1, %v2060_v14 }
 0x24e   :  { %2541 = vmatmul.mubr.msk.f32.vlgmr.msra.gmra.mrb[4].mxu1 %vm107_vm0, %v2807_v10 }
 0x24f   :  { %2543 = vmatprep.mubr.msk.f32.mxu1 %vm107_vm0, %v2808_v11 }
 0x252   :  { %2544 = vmatmul.mubr.msk.f32.gmra.mrb[6].mxu1 %vm107_vm0, %v2809_v2 }
 0x253   :  { %2546 = vmatprep.mubr.msk.f32.mxu1 %vm107_vm0, %v2810_v60 }
 0x256   :  { %2547 = vmatmul.mubr.msk.f32.gmra.mrb[8].mxu1 %vm107_vm0, %v2811_v8 }
 0x257   :  { %2549 = vmatprep.mubr.msk.f32.mxu1 %vm107_vm0, %v2812_v56 }
 0x25a   :  { %2550 = vmatmul.mubr.msk.f32.gmra.mrb[10].mxu1 %vm107_vm0, %v2813_v9 }
 0x25b   :  { %2552 = vmatprep.mubr.msk.f32.mxu1 %vm107_vm0, %v2814_v52 }
 0x25e   :  { %2553 = vmatmul.mubr.msk.f32.gmra.mrb[12].mxu1 %vm107_vm0, %v3008_v16  ;;  %v4087_v16 = vld [vmem:[#allocation9_spill] sm:$0xff] }
 0x25f   :  { %2555 = vmatprep.mubr.msk.f32.mxu1 %vm107_vm0, %v3013_v17  ;;  %v4088_v17 = vld [vmem:[#allocation10_spill] sm:$0xff] }
 0x262   :  { %2556 = vmatmul.mubr.msk.f32.gmra.mrb[14].mxu1 %vm107_vm0, %v3022_v18  ;;  %v4089_v18 = vld [vmem:[#allocation11_spill] sm:$0xff] }
 0x263   :  { %2558 = vmatprep.mubr.msk.f32.mxu1 %vm107_vm0, %v3027_v19  ;;  %v4090_v19 = vld [vmem:[#allocation12_spill] sm:$0xff] }
 0x266   :  { %2559 = vmatmul.mubr.msk.f32.gmra.mrb[16].mxu1 %vm107_vm0, %v3036_v20  ;;  %v4091_v20 = vld [vmem:[#allocation13_spill] sm:$0xff] }
 0x267   :  { %2561 = vmatprep.mubr.msk.f32.mxu1 %vm107_vm0, %v3041_v21  ;;  %v4092_v21 = vld [vmem:[#allocation14_spill] sm:$0xff] }
 0x26a   :  { %2562 = vmatmul.mubr.msk.f32.gmra.mrb[18].mxu1 %vm107_vm0, %v3050_v22  ;;  %v4093_v22 = vld [vmem:[#allocation15_spill] sm:$0xff] }
 0x26b   :  { %2564 = vmatprep.mubr.msk.f32.mxu1 %vm107_vm0, %v3055_v23  ;;  %v4094_v23 = vld [vmem:[#allocation16_spill] sm:$0xff] }
 0x26e   :  { %2565 = vmatmul.mubr.msk.f32.gmra.mrb[20].mxu1 %vm107_vm0, %v3064_v24  ;;  %v4095_v24 = vld [vmem:[#allocation17_spill] sm:$0xff] }
 0x26f   :  { %2567 = vmatprep.mubr.msk.f32.mxu1 %vm107_vm0, %v3069_v25  ;;  %v4096_v25 = vld [vmem:[#allocation18_spill] sm:$0xff] }
 0x272   :  { %2568 = vmatmul.mubr.msk.f32.gmra.mrb[22].mxu1 %vm107_vm0, %v3078_v26  ;;  %v4097_v26 = vld [vmem:[#allocation19_spill] sm:$0xff] }
 0x273   :  { %2570 = vmatprep.mubr.msk.f32.mxu1 %vm107_vm0, %v3083_v27  ;;  %v4098_v27 = vld [vmem:[#allocation20_spill] sm:$0xff] }
 0x276   :  { %2571 = vmatmul.mubr.msk.f32.gmra.mrb[24].mxu1 %vm107_vm0, %v3092_v28  ;;  %v4099_v28 = vld [vmem:[#allocation21_spill] sm:$0xff] }
 0x277   :  { %2573 = vmatprep.mubr.msk.f32.mxu1 %vm107_vm0, %v3097_v29  ;;  %v4100_v29 = vld [vmem:[#allocation22_spill] sm:$0xff] }
 0x27a   :  { %2574 = vmatmul.mubr.msk.f32.gmra.mrb[26].mxu1 %vm107_vm0, %v3106_v30  ;;  %v4101_v30 = vld [vmem:[#allocation23_spill] sm:$0xff] }
 0x27b   :  { %2576 = vmatprep.mubr.msk.f32.mxu1 %vm107_vm0, %v3111_v31  ;;  %v4102_v31 = vld [vmem:[#allocation24_spill] sm:$0xff] }
 0x27e   :  { %2577 = vmatmul.mubr.msk.f32.gmra.mrb[28].mxu1 %vm107_vm0, %v3120_v32  ;;  %v4103_v32 = vld [vmem:[#allocation25_spill] sm:$0xff] }
 0x27f   :  { %2579 = vmatprep.mubr.msk.f32.mxu1 %vm107_vm0, %v3125_v33  ;;  %v4104_v33 = vld [vmem:[#allocation26_spill] sm:$0xff] }
 0x282   :  { %2580 = vmatmul.mubr.msk.f32.gmra.mrb[30].mxu1 %vm107_vm0, %v3134_v34  ;;  %v4105_v34 = vld [vmem:[#allocation27_spill] sm:$0xff] }
 0x283   :  { %2582 = vmatprep.mubr.msk.f32.mxu1 %vm107_vm0, %v3139_v35  ;;  %v4106_v35 = vld [vmem:[#allocation28_spill] sm:$0xff] }
 0x286   :  { %2583 = vmatmul.mubr.msk.f32.gmra.mrb[32].mxu1 %vm107_vm0, %v3148_v36  ;;  %v4107_v36 = vld [vmem:[#allocation29_spill] sm:$0xff] }
 0x287   :  { %2585 = vmatprep.mubr.msk.f32.mxu1 %vm107_vm0, %v3153_v37  ;;  %v4108_v37 = vld [vmem:[#allocation31_spill] sm:$0xff] }
 0x28a   :  { %2586 = vmatmul.mubr.msk.f32.gmra.mrb[34].mxu1 %vm107_vm0, %v3162_v38  ;;  %v2127_v38 = vld [vmem:[%s4034_s6 + $0x1] sm:$0x1] }
 0x28b   :  { %2588 = vmatprep.mubr.msk.f32.mxu1 %vm107_vm0, %v3167_v39  ;;  %v1547_v39 = vadd.f32 1e-05, %v2127_v38 }
 0x28d   :  { %2796 = vrsqrt.f32 %v1547_v39 }
 0x28e   :  { %2589 = vmatmul.mubr.msk.f32.gmra.mrb[36].mxu1 %vm107_vm0, %v3176_v40 }
 0x28f   :  { %2591 = vmatprep.mubr.msk.f32.mxu1 %vm107_vm0, %v3181_v41  ;;  %v2126_v41 = vld [vmem:[%s4031_s3 + $0x1] sm:$0x1]  ;;  %s2889_s3 = smov [#allocation4]  }
 0x292   :  { %2592 = vmatmul.mubr.msk.f32.gmra.mrb[38].mxu1 %vm107_vm0, %v3190_v42 }
 0x293   :  { %2594 = vmatprep.mubr.msk.f32.mxu1 %vm107_vm0, %v3195_v43  ;;  %v2054_v43 = vld [vmem:[%s4036_s8] ss:$0 sm:$0xff] }
 0x296   :  { %2595 = vmatmul.mubr.msk.f32.gmra.mrb[40].mxu1 %vm107_vm0, %v3204_v44  ;;  %v2129_v44 = vld [vmem:[%s4033_s5 + $0x1] sm:$0x1]  ;;  %s2890_s5 = smov [#allocation2]  }
 0x297   :  { %2597 = vmatprep.mubr.msk.f32.mxu1 %vm107_vm0, %v3209_v45  ;;  %v2797_v40 = vpop.eup %2796  ;;  %s1954_s8 = sshll.u32 %s2890_s5, 4  ;;  %s1955_s8 = int_to_ptr.vmem [resolvable:$true] %s1954_s8 }
 0x298   :  { %v1549_v42 = vmul.f32 %v2797_v40, %v2126_v41 }
 0x29a   :  { %2598 = vmatmul.mubr.msk.f32.gmra.mrb[42].mxu1 %vm107_vm0, %v3218_v46  ;;  %v3806_v1 = vrot.slane %v1549_v42, %v4109_v13 }
 0x29b   :  { %2600 = vmatprep.mubr.msk.f32.mxu1 %vm107_vm0, %v3223_v47 }
 0x29e   :  { %2601 = vmatmul.mubr.msk.f32.gmra.mrb[44].mxu1 %vm107_vm0, %v3232_v48  ;;  %v1554_v48 = vmul.f32 %v2129_v44, %v1549_v42 }
 0x29f   :  { %2603 = vmatprep.mubr.msk.f32.mxu1 %vm107_vm0, %v3237_v49  ;;  %v2128_v49 = vld [vmem:[%s4032_s4 + $0x1] sm:$0x1]  ;;  %s1964_s4 = sshll.u32 %s2889_s3, 4  ;;  %s1965_s4 = int_to_ptr.vmem [resolvable:$true] %s1964_s4 }
 0x2a0   :  { %v1555_v61 = vsub.f32 %v2128_v49, %v1554_v48  ;;  %s2815_s13 = scalar_lea.vmem %s1965_s4, 32  ;;  %p2820_p1 = scmp.lt.s32.totalorder %s1965_s4, %s1965_s4 }
 0x2a1   :  { %p2816_p0 = scmp.ne.s32.totalorder %s1965_s4, %s2815_s13  ;;  %p2821_p2 = scmp.lt.s32.totalorder %s2815_s13, %s2815_s13 }
 0x2a2   :  { %2604 = vmatmul.mubr.msk.f32.gmra.mrb[46].mxu1 %vm107_vm0, %v4087_v16  ;;  %v3809_v58 = vrot.slane %v1555_v61, %v4109_v13 }
 0x2a3   :  { %2606 = vmatprep.mubr.msk.f32.mxu1 %vm107_vm0, %v4088_v17  ;;  %p2822_p3 = por %p2821_p2, %p2820_p1 }
 0x2a5   :  { %p2823_p4 = pnand %p2822_p3, %p2816_p0 }
 0x2a6   :  { %2607 = vmatmul.mubr.msk.f32.gmra.mrb[48].mxu1 %vm107_vm0, %v4089_v18 }
 0x2a7   :  { %2609 = vmatprep.mubr.msk.f32.mxu1 %vm107_vm0, %v4090_v19 }
 0x2aa   :  { %2610 = vmatmul.mubr.msk.f32.gmra.mrb[50].mxu1 %vm107_vm0, %v4091_v20 }
 0x2ab   :  { %2612 = vmatprep.mubr.msk.f32.mxu1 %vm107_vm0, %v4092_v21 }
 0x2ae   :  { %2613 = vmatmul.mubr.msk.f32.gmra.mrb[52].mxu1 %vm107_vm0, %v4093_v22 }
 0x2af   :  { %2615 = vmatprep.mubr.msk.f32.mxu1 %vm107_vm0, %v4094_v23 }
 0x2b2   :  { %2616 = vmatmul.mubr.msk.f32.gmra.mrb[54].mxu1 %vm107_vm0, %v4095_v24 }
 0x2b3   :  { %2618 = vmatprep.mubr.msk.f32.mxu1 %vm107_vm0, %v4096_v25 }
 0x2b6   :  { %2619 = vmatmul.mubr.msk.f32.gmra.mrb[56].mxu1 %vm107_vm0, %v4097_v26 }
 0x2b7   :  { %2621 = vmatprep.mubr.msk.f32.mxu1 %vm107_vm0, %v4098_v27 }
 0x2ba   :  { %2622 = vmatmul.mubr.msk.f32.gmra.mrb[58].mxu1 %vm107_vm0, %v4099_v28 }
 0x2bb   :  { %2624 = vmatprep.mubr.msk.f32.mxu1 %vm107_vm0, %v4100_v29 }
 0x2be   :  { %2625 = vmatmul.mubr.msk.f32.gmra.mrb[60].mxu1 %vm107_vm0, %v4101_v30 }
 0x2bf   :  { %2627 = vmatprep.mubr.msk.f32.mxu1 %vm107_vm0, %v4102_v31 }
 0x2c2   :  { %2628 = vmatmul.mubr.msk.f32.gmra.mrb[62].mxu1 %vm107_vm0, %v4103_v32 }
 0x2c3   :  { %2630 = vmatprep.mubr.msk.f32.mxu1 %vm107_vm0, %v4104_v33 }
 0x2c6   :  { %2631 = vmatmul.mubr.msk.f32.gmra.mrb[64].mxu1 %vm107_vm0, %v4105_v34 }
 0x2c7   :  { %2633 = vmatprep.mubr.msk.f32.mxu1 %vm107_vm0, %v4106_v35 }
 0x2ca   :  { %2634 = vmatmul.mubr.msk.f32.gmra.mrb[66].mxu1 %vm107_vm0, %v4107_v36 }
 0x2cb   :  { %1824 = vmatprep.mubr.f32.mxu1 %v4108_v37 }
 0x317   :  { %v1145_v45 = vpop.f32.mrb[2].mxu1 }
 0x318   :  { %v1146_v46 = vadd.f32 %v2054_v43, %v1145_v45  ;;  %v2529_v47 = vpop.f32.mrb[3].mxu1 }
 0x31a   :  { %1944 = vst.msk [vmem:[#allocation2] sm:$0x3] %vm1943_vm5, %v1146_v46 }
 0x321   :  { %v2542_v59 = vpop.f32.mrb[4].mxu1 }
 0x322   :  { %v1563_v53 = vmul.f32 %v2542_v59, %v3806_v1  ;;  %v1224_v15 = vpop.f32.mrb[5].mxu1 }
 0x323   :  { %v1562_v63 = vmul.f32 %v3806_v1, %v1224_v15 }
 0x324   :  { %v1633_v55 = vadd.f32 %v3809_v58, %v1563_v53 }
 0x325   :  { %v1632_v57 = vadd.f32 %v3809_v58, %v1562_v63  ;;  %v2545_v12 = vpop.f32.mrb[6].mxu1 }
 0x326   :  { %v1697_v4 = vmax.f32 %v1633_v55, 0.0  ;;  %v1565_v51 = vmul.f32 %v2545_v12, %v3806_v1  ;;  %v1234_v0 = vpop.f32.mrb[7].mxu1 }
 0x327   :  { %v1696_v3 = vmax.f32 %v1632_v57, 0.0  ;;  %v1564_v54 = vmul.f32 %v3806_v1, %v1234_v0 }
 0x328   :  { %v1635_v50 = vadd.f32 %v3809_v58, %v1565_v51 }
 0x329   :  { %v3818_v5 = vpack.c.bf16 %v1697_v4, %v1696_v3  ;;  %v1634_v14 = vadd.f32 %v3809_v58, %v1564_v54  ;;  %v2548_v10 = vpop.f32.mrb[8].mxu1 }
 0x32a   :  { %v1699_v11 = vmax.f32 %v1635_v50, 0.0  ;;  %v1567_v2 = vmul.f32 %v2548_v10, %v3806_v1  ;;  %v1244_v60 = vpop.f32.mrb[9].mxu1 }
 0x32b   :  { %v1698_v8 = vmax.f32 %v1634_v14, 0.0  ;;  %v1566_v56 = vmul.f32 %v3806_v1, %v1244_v60 }
 0x32c   :  { %v1637_v9 = vadd.f32 %v3809_v58, %v1567_v2 }
 0x32d   :  { %v3824_v52 = vpack.c.bf16 %v1699_v11, %v1698_v8  ;;  %v1636_v16 = vadd.f32 %v3809_v58, %v1566_v56  ;;  %v2551_v17 = vpop.f32.mrb[10].mxu1 }
 0x32e   :  { %v1701_v18 = vmax.f32 %v1637_v9, 0.0  ;;  %v1569_v19 = vmul.f32 %v2551_v17, %v3806_v1  ;;  %v1254_v20 = vpop.f32.mrb[11].mxu1 }
 0x32f   :  { %v1700_v21 = vmax.f32 %v1636_v16, 0.0  ;;  %v1568_v22 = vmul.f32 %v3806_v1, %v1254_v20 }
 0x330   :  { %v1639_v23 = vadd.f32 %v3809_v58, %v1569_v19 }
 0x331   :  { %v3830_v24 = vpack.c.bf16 %v1701_v18, %v1700_v21  ;;  %v1638_v25 = vadd.f32 %v3809_v58, %v1568_v22  ;;  %v2554_v26 = vpop.f32.mrb[12].mxu1 }
 0x332   :  { %v1703_v27 = vmax.f32 %v1639_v23, 0.0  ;;  %v1571_v28 = vmul.f32 %v2554_v26, %v3806_v1  ;;  %v1264_v29 = vpop.f32.mrb[13].mxu1 }
 0x333   :  { %v1702_v30 = vmax.f32 %v1638_v25, 0.0  ;;  %v1570_v31 = vmul.f32 %v3806_v1, %v1264_v29 }
 0x334   :  { %v1641_v32 = vadd.f32 %v3809_v58, %v1571_v28 }
 0x335   :  { %v3836_v33 = vpack.c.bf16 %v1703_v27, %v1702_v30  ;;  %v1640_v34 = vadd.f32 %v3809_v58, %v1570_v31  ;;  %v2557_v35 = vpop.f32.mrb[14].mxu1 }
 0x336   :  { %v1705_v36 = vmax.f32 %v1641_v32, 0.0  ;;  %v1573_v37 = vmul.f32 %v2557_v35, %v3806_v1  ;;  %v1274_v38 = vpop.f32.mrb[15].mxu1 }
 0x337   :  { %v1704_v39 = vmax.f32 %v1640_v34, 0.0  ;;  %v1572_v40 = vmul.f32 %v3806_v1, %v1274_v38 }
 0x338   :  { %v1643_v41 = vadd.f32 %v3809_v58, %v1573_v37 }
 0x339   :  { %v3842_v42 = vpack.c.bf16 %v1705_v36, %v1704_v39  ;;  %v1642_v43 = vadd.f32 %v3809_v58, %v1572_v40  ;;  %v2560_v44 = vpop.f32.mrb[16].mxu1 }
 0x33a   :  { %v1707_v45 = vmax.f32 %v1643_v41, 0.0  ;;  %v1575_v46 = vmul.f32 %v2560_v44, %v3806_v1  ;;  %v1284_v47 = vpop.f32.mrb[17].mxu1 }
 0x33b   :  { %v1706_v48 = vmax.f32 %v1642_v43, 0.0  ;;  %v1574_v49 = vmul.f32 %v3806_v1, %v1284_v47 }
 0x33c   :  { %v1645_v61 = vadd.f32 %v3809_v58, %v1575_v46 }
 0x33d   :  { %v3848_v13 = vpack.c.bf16 %v1707_v45, %v1706_v48  ;;  %v1644_v59 = vadd.f32 %v3809_v58, %v1574_v49  ;;  %v2563_v53 = vpop.f32.mrb[18].mxu1 }
 0x33e   :  { %v1709_v15 = vmax.f32 %v1645_v61, 0.0  ;;  %v1577_v63 = vmul.f32 %v2563_v53, %v3806_v1  ;;  %v1294_v55 = vpop.f32.mrb[19].mxu1 }
 0x33f   :  { %v1708_v57 = vmax.f32 %v1644_v59, 0.0  ;;  %v1576_v12 = vmul.f32 %v3806_v1, %v1294_v55 }
 0x340   :  { %v1647_v4 = vadd.f32 %v3809_v58, %v1577_v63 }
 0x341   :  { %v3854_v51 = vpack.c.bf16 %v1709_v15, %v1708_v57  ;;  %v1646_v0 = vadd.f32 %v3809_v58, %v1576_v12  ;;  %v2566_v3 = vpop.f32.mrb[20].mxu1 }
 0x342   :  { %v1711_v54 = vmax.f32 %v1647_v4, 0.0  ;;  %v1579_v50 = vmul.f32 %v2566_v3, %v3806_v1  ;;  %v1304_v14 = vpop.f32.mrb[21].mxu1 }
 0x343   :  { %v1710_v10 = vmax.f32 %v1646_v0, 0.0  ;;  %v1578_v11 = vmul.f32 %v3806_v1, %v1304_v14 }
 0x344   :  { %v1649_v2 = vadd.f32 %v3809_v58, %v1579_v50 }
 0x345   :  { %v3860_v60 = vpack.c.bf16 %v1711_v54, %v1710_v10  ;;  %v1648_v8 = vadd.f32 %v3809_v58, %v1578_v11  ;;  %v2569_v56 = vpop.f32.mrb[22].mxu1 }
 0x346   :  { %v1713_v9 = vmax.f32 %v1649_v2, 0.0  ;;  %v1581_v16 = vmul.f32 %v2569_v56, %v3806_v1  ;;  %v1314_v17 = vpop.f32.mrb[23].mxu1 }
 0x347   :  { %v1712_v18 = vmax.f32 %v1648_v8, 0.0  ;;  %v1580_v19 = vmul.f32 %v3806_v1, %v1314_v17 }
 0x348   :  { %v1651_v20 = vadd.f32 %v3809_v58, %v1581_v16 }
 0x349   :  { %v1650_v21 = vadd.f32 %v3809_v58, %v1580_v19  ;;  %v2572_v22 = vpop.f32.mrb[24].mxu1  ;;  %v2722_v23 = vpack.c.bf16 %v1713_v9, %v1712_v18 }
 0x34a   :  { %v1715_v25 = vmax.f32 %v1651_v20, 0.0  ;;  %v1583_v26 = vmul.f32 %v2572_v22, %v3806_v1  ;;  %v1324_v27 = vpop.f32.mrb[25].mxu1 }
 0x34b   :  { %v1714_v28 = vmax.f32 %v1650_v21, 0.0  ;;  %v1582_v29 = vmul.f32 %v3806_v1, %v1324_v27  ;;  %2723 = vmatprep.subr.bf16.mxu1 %v2722_v23 }
 0x34c   :  { %v1653_v30 = vadd.f32 %v3809_v58, %v1583_v26  ;;  %2725 = vmatpush3.bf16.msra.mxu1 %v3818_v5 }
 0x34d   :  { %v1652_v31 = vadd.f32 %v3809_v58, %v1582_v29  ;;  %v2575_v32 = vpop.f32.mrb[26].mxu1  ;;  %v2726_v34 = vpack.c.bf16 %v1715_v25, %v1714_v28 }
 0x34e   :  { %v1717_v35 = vmax.f32 %v1653_v30, 0.0  ;;  %v1585_v36 = vmul.f32 %v2575_v32, %v3806_v1  ;;  %v1334_v37 = vpop.f32.mrb[27].mxu1 }
 0x34f   :  { %v1716_v38 = vmax.f32 %v1652_v31, 0.0  ;;  %v1584_v39 = vmul.f32 %v3806_v1, %v1334_v37  ;;  %2727 = vmatprep.subr.bf16.mxu1 %v2726_v34 }
 0x350   :  { %v1655_v40 = vadd.f32 %v3809_v58, %v1585_v36  ;;  %2729 = vmatpush3.bf16.msra.mxu1 %v3824_v52 }
 0x351   :  { %v1654_v41 = vadd.f32 %v3809_v58, %v1584_v39  ;;  %v2578_v43 = vpop.f32.mrb[28].mxu1  ;;  %v2730_v5 = vpack.c.bf16 %v1717_v35, %v1716_v38 }
 0x352   :  { %v1719_v44 = vmax.f32 %v1655_v40, 0.0  ;;  %v1587_v45 = vmul.f32 %v2578_v43, %v3806_v1  ;;  %v1344_v46 = vpop.f32.mrb[29].mxu1 }
 0x353   :  { %v1718_v47 = vmax.f32 %v1654_v41, 0.0  ;;  %v1586_v48 = vmul.f32 %v3806_v1, %v1344_v46  ;;  %2731 = vmatprep.subr.bf16.mxu1 %v2730_v5 }
 0x354   :  { %v1657_v49 = vadd.f32 %v3809_v58, %v1587_v45  ;;  %2733 = vmatpush3.bf16.msra.mxu1 %v3830_v24 }
 0x355   :  { %v1656_v61 = vadd.f32 %v3809_v58, %v1586_v48  ;;  %v2581_v59 = vpop.f32.mrb[30].mxu1  ;;  %v2734_v52 = vpack.c.bf16 %v1719_v44, %v1718_v47 }
 0x356   :  { %v1721_v53 = vmax.f32 %v1657_v49, 0.0  ;;  %v1589_v15 = vmul.f32 %v2581_v59, %v3806_v1  ;;  %v1354_v63 = vpop.f32.mrb[31].mxu1 }
 0x357   :  { %v1720_v55 = vmax.f32 %v1656_v61, 0.0  ;;  %v1588_v57 = vmul.f32 %v3806_v1, %v1354_v63  ;;  %2735 = vmatprep.subr.bf16.mxu1 %v2734_v52 }
 0x358   :  { %v1659_v12 = vadd.f32 %v3809_v58, %v1589_v15  ;;  %2737 = vmatpush3.bf16.msra.mxu1 %v3836_v33 }
 0x359   :  { %v1658_v4 = vadd.f32 %v3809_v58, %v1588_v57  ;;  %v2584_v0 = vpop.f32.mrb[32].mxu1  ;;  %v2738_v24 = vpack.c.bf16 %v1721_v53, %v1720_v55 }
 0x35a   :  { %v1723_v3 = vmax.f32 %v1659_v12, 0.0  ;;  %v1591_v54 = vmul.f32 %v2584_v0, %v3806_v1  ;;  %v1364_v50 = vpop.f32.mrb[33].mxu1 }
 0x35b   :  { %v1722_v14 = vmax.f32 %v1658_v4, 0.0  ;;  %v1590_v10 = vmul.f32 %v3806_v1, %v1364_v50  ;;  %2739 = vmatprep.subr.bf16.mxu1 %v2738_v24 }
 0x35c   :  { %v1661_v11 = vadd.f32 %v3809_v58, %v1591_v54  ;;  %2741 = vmatpush3.bf16.msra.mxu1 %v3842_v42 }
 0x35d   :  { %v1660_v2 = vadd.f32 %v3809_v58, %v1590_v10  ;;  %v2587_v8 = vpop.f32.mrb[34].mxu1  ;;  %v2742_v33 = vpack.c.bf16 %v1723_v3, %v1722_v14 }
 0x35e   :  { %v1725_v56 = vmax.f32 %v1661_v11, 0.0  ;;  %v1593_v9 = vmul.f32 %v2587_v8, %v3806_v1  ;;  %v1374_v16 = vpop.f32.mrb[35].mxu1 }
 0x35f   :  { %v1724_v17 = vmax.f32 %v1660_v2, 0.0  ;;  %v1592_v18 = vmul.f32 %v3806_v1, %v1374_v16  ;;  %2743 = vmatprep.subr.bf16.mxu1 %v2742_v33 }
 0x360   :  { %v1663_v19 = vadd.f32 %v3809_v58, %v1593_v9  ;;  %2745 = vmatpush3.bf16.msra.mxu1 %v3848_v13 }
 0x361   :  { %v1662_v20 = vadd.f32 %v3809_v58, %v1592_v18  ;;  %v2746_v21 = vpack.c.bf16 %v1725_v56, %v1724_v17  ;;  %v2590_v42 = vpop.f32.mrb[36].mxu1 }
 0x362   :  { %v1727_v22 = vmax.f32 %v1663_v19, 0.0  ;;  %v1595_v23 = vmul.f32 %v2590_v42, %v3806_v1  ;;  %v1384_v25 = vpop.f32.mrb[37].mxu1 }
 0x363   :  { %v1726_v26 = vmax.f32 %v1662_v20, 0.0  ;;  %2747 = vmatprep.subr.bf16.mxu1 %v2746_v21  ;;  %v1594_v27 = vmul.f32 %v3806_v1, %v1384_v25 }
 0x364   :  { %2749 = vmatpush3.bf16.msra.mxu1 %v3854_v51  ;;  %v1665_v28 = vadd.f32 %v3809_v58, %v1595_v23 }
 0x365   :  { %v2750_v29 = vpack.c.bf16 %v1727_v22, %v1726_v26  ;;  %v1664_v30 = vadd.f32 %v3809_v58, %v1594_v27  ;;  %v2593_v13 = vpop.f32.mrb[38].mxu1 }
 0x366   :  { %v1729_v31 = vmax.f32 %v1665_v28, 0.0  ;;  %v1597_v32 = vmul.f32 %v2593_v13, %v3806_v1  ;;  %v1394_v34 = vpop.f32.mrb[39].mxu1 }
 0x367   :  { %2751 = vmatprep.subr.bf16.mxu1 %v2750_v29  ;;  %v1728_v35 = vmax.f32 %v1664_v30, 0.0  ;;  %v1596_v36 = vmul.f32 %v3806_v1, %v1394_v34 }
 0x368   :  { %2753 = vmatpush3.bf16.msra.mxu1 %v3860_v60  ;;  %v1667_v37 = vadd.f32 %v3809_v58, %v1597_v32 }
 0x369   :  { %v3906_v38 = vpack.c.bf16 %v1729_v31, %v1728_v35  ;;  %v1666_v51 = vadd.f32 %v3809_v58, %v1596_v36  ;;  %v2596_v39 = vpop.f32.mrb[40].mxu1 }
 0x36a   :  { %v1731_v40 = vmax.f32 %v1667_v37, 0.0  ;;  %v1599_v41 = vmul.f32 %v2596_v39, %v3806_v1  ;;  %v1404_v43 = vpop.f32.mrb[41].mxu1 }
 0x36b   :  { %v1730_v5 = vmax.f32 %v1666_v51, 0.0  ;;  %v1598_v44 = vmul.f32 %v3806_v1, %v1404_v43  ;;  %1825 = vmatmul.mubr.f32.vlgmr.msra.gmra.mrb[68].mxu1 %v3417_v7 }
 0x36c   :  { %v1669_v45 = vadd.f32 %v3809_v58, %v1599_v41 }
 0x36d   :  { %v3913_v46 = vpack.c.bf16 %v1731_v40, %v1730_v5  ;;  %v1668_v60 = vadd.f32 %v3809_v58, %v1598_v44  ;;  %v2599_v47 = vpop.f32.mrb[42].mxu1 }
 0x36e   :  { %v1733_v48 = vmax.f32 %v1669_v45, 0.0  ;;  %v1601_v49 = vmul.f32 %v2599_v47, %v3806_v1  ;;  %v1414_v61 = vpop.f32.mrb[43].mxu1 }
 0x36f   :  { %v1732_v59 = vmax.f32 %v1668_v60, 0.0  ;;  %v1600_v52 = vmul.f32 %v3806_v1, %v1414_v61 }
 0x370   :  { %v1671_v53 = vadd.f32 %v3809_v58, %v1601_v49 }
 0x371   :  { %v3919_v15 = vpack.c.bf16 %v1733_v48, %v1732_v59  ;;  %v1670_v7 = vadd.f32 %v3809_v58, %v1600_v52  ;;  %v2602_v63 = vpop.f32.mrb[44].mxu1 }
 0x372   :  { %v1735_v55 = vmax.f32 %v1671_v53, 0.0  ;;  %v1603_v57 = vmul.f32 %v2602_v63, %v3806_v1  ;;  %v1424_v12 = vpop.f32.mrb[45].mxu1 }
 0x373   :  { %v1734_v4 = vmax.f32 %v1670_v7, 0.0  ;;  %v1602_v0 = vmul.f32 %v3806_v1, %v1424_v12 }
 0x374   :  { %v1673_v24 = vadd.f32 %v3809_v58, %v1603_v57 }
 0x375   :  { %v3925_v3 = vpack.c.bf16 %v1735_v55, %v1734_v4  ;;  %v1672_v54 = vadd.f32 %v3809_v58, %v1602_v0  ;;  %v2605_v50 = vpop.f32.mrb[46].mxu1 }
 0x376   :  { %v1737_v14 = vmax.f32 %v1673_v24, 0.0  ;;  %v1605_v10 = vmul.f32 %v2605_v50, %v3806_v1  ;;  %v1434_v11 = vpop.f32.mrb[47].mxu1 }
 0x377   :  { %v1736_v2 = vmax.f32 %v1672_v54, 0.0  ;;  %v1604_v8 = vmul.f32 %v3806_v1, %v1434_v11 }
 0x378   :  { %v1675_v33 = vadd.f32 %v3809_v58, %v1605_v10 }
 0x379   :  { %v3931_v56 = vpack.c.bf16 %v1737_v14, %v1736_v2  ;;  %v1674_v9 = vadd.f32 %v3809_v58, %v1604_v8  ;;  %v2608_v16 = vpop.f32.mrb[48].mxu1 }
 0x37a   :  { %v1739_v17 = vmax.f32 %v1675_v33, 0.0  ;;  %v1607_v18 = vmul.f32 %v2608_v16, %v3806_v1  ;;  %v1444_v19 = vpop.f32.mrb[49].mxu1 }
 0x37b   :  { %v1738_v20 = vmax.f32 %v1674_v9, 0.0  ;;  %v1606_v21 = vmul.f32 %v3806_v1, %v1444_v19 }
 0x37c   :  { %v1677_v42 = vadd.f32 %v3809_v58, %v1607_v18 }
 0x37d   :  { %v3937_v22 = vpack.c.bf16 %v1739_v17, %v1738_v20  ;;  %v1676_v23 = vadd.f32 %v3809_v58, %v1606_v21  ;;  %v2611_v25 = vpop.f32.mrb[50].mxu1 }
 0x37e   :  { %v1741_v26 = vmax.f32 %v1677_v42, 0.0  ;;  %v1609_v27 = vmul.f32 %v2611_v25, %v3806_v1  ;;  %v1454_v28 = vpop.f32.mrb[51].mxu1 }
 0x37f   :  { %v1740_v29 = vmax.f32 %v1676_v23, 0.0  ;;  %v1608_v30 = vmul.f32 %v3806_v1, %v1454_v28 }
 0x380   :  { %v1679_v13 = vadd.f32 %v3809_v58, %v1609_v27 }
 0x381   :  { %v3943_v31 = vpack.c.bf16 %v1741_v26, %v1740_v29  ;;  %v1678_v32 = vadd.f32 %v3809_v58, %v1608_v30  ;;  %v2614_v34 = vpop.f32.mrb[52].mxu1 }
 0x382   :  { %v1743_v35 = vmax.f32 %v1679_v13, 0.0  ;;  %v1611_v36 = vmul.f32 %v2614_v34, %v3806_v1  ;;  %v1464_v37 = vpop.f32.mrb[53].mxu1 }
 0x383   :  { %v1742_v51 = vmax.f32 %v1678_v32, 0.0  ;;  %v1610_v39 = vmul.f32 %v3806_v1, %v1464_v37 }
 0x384   :  { %v1681_v40 = vadd.f32 %v3809_v58, %v1611_v36 }
 0x385   :  { %v3949_v41 = vpack.c.bf16 %v1743_v35, %v1742_v51  ;;  %v1680_v43 = vadd.f32 %v3809_v58, %v1610_v39  ;;  %v2617_v5 = vpop.f32.mrb[54].mxu1 }
 0x386   :  { %v1745_v44 = vmax.f32 %v1681_v40, 0.0  ;;  %v1613_v45 = vmul.f32 %v2617_v5, %v3806_v1  ;;  %v1474_v60 = vpop.f32.mrb[55].mxu1 }
 0x387   :  { %v1744_v47 = vmax.f32 %v1680_v43, 0.0  ;;  %v1612_v48 = vmul.f32 %v3806_v1, %v1474_v60 }
 0x388   :  { %v1683_v49 = vadd.f32 %v3809_v58, %v1613_v45 }
 0x389   :  { %v1682_v61 = vadd.f32 %v3809_v58, %v1612_v48  ;;  %v2620_v59 = vpop.f32.mrb[56].mxu1  ;;  %v2754_v52 = vpack.c.bf16 %v1745_v44, %v1744_v47 }
 0x38a   :  { %v1747_v53 = vmax.f32 %v1683_v49, 0.0  ;;  %v1615_v7 = vmul.f32 %v2620_v59, %v3806_v1  ;;  %v1484_v63 = vpop.f32.mrb[57].mxu1 }
 0x38b   :  { %v1746_v55 = vmax.f32 %v1682_v61, 0.0  ;;  %v1614_v57 = vmul.f32 %v3806_v1, %v1484_v63  ;;  %2755 = vmatprep.subr.bf16.mxu0 %v2754_v52 }
 0x38c   :  { %v1685_v12 = vadd.f32 %v3809_v58, %v1615_v7  ;;  %2757 = vmatpush3.bf16.msra.mxu0 %v3906_v38 }
 0x38d   :  { %v1684_v4 = vadd.f32 %v3809_v58, %v1614_v57  ;;  %v2623_v0 = vpop.f32.mrb[58].mxu1  ;;  %v2758_v24 = vpack.c.bf16 %v1747_v53, %v1746_v55 }
 0x38e   :  { %v1749_v54 = vmax.f32 %v1685_v12, 0.0  ;;  %v1617_v50 = vmul.f32 %v2623_v0, %v3806_v1  ;;  %v1494_v14 = vpop.f32.mrb[59].mxu1  ;;  %v1904_v12 = vpop.xlane.xlu0 %1903 }
 0x38f   :  { %v1748_v10 = vmax.f32 %v1684_v4, 0.0  ;;  %v1616_v11 = vmul.f32 %v3806_v1, %v1494_v14  ;;  %2759 = vmatprep.subr.bf16.mxu0 %v2758_v24  ;;  %2798 = vrsqrt.f32 %v1904_v12  ;;  %vm1907_vm6 = vcmp.eq.f32.partialorder %v1904_v12, inf }
 0x390   :  { %v1687_v2 = vadd.f32 %v3809_v58, %v1617_v50  ;;  %2761 = vmatpush3.bf16.msra.mxu0 %v3913_v46  ;;  %vm1909_vm7 = vcmp.eq.f32.partialorder %v1904_v12, 0.0 }
 0x391   :  { %v1686_v8 = vadd.f32 %v3809_v58, %v1616_v11  ;;  %v2626_v33 = vpop.f32.mrb[60].mxu1  ;;  %v2762_v38 = vpack.c.bf16 %v1749_v54, %v1748_v10 }
 0x392   :  { %v1751_v9 = vmax.f32 %v1687_v2, 0.0  ;;  %v1619_v16 = vmul.f32 %v2626_v33, %v3806_v1  ;;  %v1504_v17 = vpop.f32.mrb[61].mxu1 }
 0x393   :  { %v1750_v18 = vmax.f32 %v1686_v8, 0.0  ;;  %v1618_v19 = vmul.f32 %v3806_v1, %v1504_v17  ;;  %2763 = vmatprep.subr.bf16.mxu0 %v2762_v38 }
 0x394   :  { %v1689_v20 = vadd.f32 %v3809_v58, %v1619_v16  ;;  %2765 = vmatpush3.bf16.msra.mxu0 %v3919_v15 }
 0x395   :  { %v1688_v21 = vadd.f32 %v3809_v58, %v1618_v19  ;;  %v2629_v42 = vpop.f32.mrb[62].mxu1  ;;  %v2766_v46 = vpack.c.bf16 %v1751_v9, %v1750_v18 }
 0x396   :  { %v1753_v23 = vmax.f32 %v1689_v20, 0.0  ;;  %v1621_v25 = vmul.f32 %v2629_v42, %v3806_v1  ;;  %v1514_v26 = vpop.f32.mrb[63].mxu1 }
 0x397   :  { %v1752_v27 = vmax.f32 %v1688_v21, 0.0  ;;  %v1620_v28 = vmul.f32 %v3806_v1, %v1514_v26  ;;  %2767 = vmatprep.subr.bf16.mxu0 %v2766_v46 }
 0x398   :  { %v1691_v29 = vadd.f32 %v3809_v58, %v1621_v25  ;;  %2769 = vmatpush3.bf16.msra.mxu0 %v3925_v3 }
 0x399   :  { %v1690_v30 = vadd.f32 %v3809_v58, %v1620_v28  ;;  %v2632_v13 = vpop.f32.mrb[64].mxu1  ;;  %v2770_v15 = vpack.c.bf16 %v1753_v23, %v1752_v27 }
 0x39a   :  { %v1755_v32 = vmax.f32 %v1691_v29, 0.0  ;;  %v1623_v34 = vmul.f32 %v2632_v13, %v3806_v1  ;;  %v1524_v35 = vpop.f32.mrb[65].mxu1 }
 0x39b   :  { %v1754_v36 = vmax.f32 %v1690_v30, 0.0  ;;  %v1622_v37 = vmul.f32 %v3806_v1, %v1524_v35  ;;  %2771 = vmatprep.subr.bf16.mxu0 %v2770_v15 }
 0x39c   :  { %v1693_v51 = vadd.f32 %v3809_v58, %v1623_v34  ;;  %2773 = vmatpush3.bf16.msra.mxu0 %v3931_v56 }
 0x39d   :  { %v1692_v39 = vadd.f32 %v3809_v58, %v1622_v37  ;;  %v2635_v40 = vpop.f32.mrb[66].mxu1  ;;  %v2774_v3 = vpack.c.bf16 %v1755_v32, %v1754_v36 }
 0x39e   :  { %v1757_v43 = vmax.f32 %v1693_v51, 0.0  ;;  %v1625_v5 = vmul.f32 %v2635_v40, %v3806_v1  ;;  %v1534_v44 = vpop.f32.mrb[67].mxu1 }
 0x39f   :  { %v1756_v45 = vmax.f32 %v1692_v39, 0.0  ;;  %v1624_v60 = vmul.f32 %v3806_v1, %v1534_v44  ;;  %2775 = vmatprep.subr.bf16.mxu0 %v2774_v3 }
 0x3a0   :  { %v1695_v47 = vadd.f32 %v3809_v58, %v1625_v5  ;;  %2777 = vmatpush3.bf16.msra.mxu0 %v3937_v22 }
 0x3a1   :  { %v1694_v48 = vadd.f32 %v3809_v58, %v1624_v60  ;;  %v2778_v49 = vpack.c.bf16 %v1757_v43, %v1756_v45 }
 0x3a2   :  { %v1759_v56 = vmax.f32 %v1695_v47, 0.0 }
 0x3a3   :  { %v1758_v61 = vmax.f32 %v1694_v48, 0.0  ;;  %2779 = vmatprep.subr.bf16.mxu0 %v2778_v49 }
 0x3a4   :  { %2781 = vmatpush3.bf16.msra.mxu0 %v3943_v31  ;;  %v2799_v31 = vpop.eup %2798 }
 0x3a5   :  { %v2782_v59 = vpack.c.bf16 %v1759_v56, %v1758_v61  ;;  %v1906_v0 = vmul.f32 %v2799_v31, %v1904_v12 }
 0x3a7   :  { %2783 = vmatprep.subr.bf16.mxu0 %v2782_v59 }
 0x3a8   :  { %2785 = vmatpush3.bf16.msra.mxu0 %v3949_v41  ;;  %v1908_v41 = vsel %vm1907_vm6, %v1904_v12, %v1906_v0 }
 0x3ab   :  { %1895 = vmatmul.mubr.f32.vlgmr.msra.gmra.mrb[66].mxu0 %v3420_v62  ;;  %v1910_v62 = vand.u32 2147483648, %v1904_v12 }
 0x3ad   :  { %v1911_v24 = vsel %vm1909_vm7, %v1910_v62, %v1908_v41 }
 0x3ae   :  { %v1912_v50 = vmax.f32 %v1911_v24, 1e-12 }
 0x43e   :  { %v2375_v1 = vpop.f32.mrb[68].mxu1 }
 0x43f   :  { %v2376_v52 = vpop.f32.mrb[69].mxu1 }
 0x440   :  { %v2377_v53 = vadd.f32 %v2376_v52, %v2375_v1 }
 0x47e   :  { %v2410_v7 = vpop.f32.mrb[66].mxu0 }
 0x47f   :  { %v2411_v63 = vpop.f32.mrb[67].mxu0 }
 0x480   :  { %v2412_v22 = vadd.f32 %v2411_v63, %v2410_v7 }
 0x482   :  { %v1897_v55 = vadd.f32 %v2412_v22, %v2377_v53 }
 0x484   :  { %v1915_v58 = vmul.f32 %v1897_v55, %v1897_v55 }
 0x486   :  { %v1916_v57 = vsel %vm1901_vm4, %v1915_v58, 0.0 }
 0x487   :  { %1917 = vadd.xlane.f32.xlu0 %v1916_v57 }
 0x514   :  { %v1918_v4 = vpop.xlane.xlu0 %1917 }
 0x515   :  { %2800 = vrsqrt.f32 %v1918_v4  ;;  %vm1921_vm8 = vcmp.eq.f32.partialorder %v1918_v4, inf  ;;  %v1924_v10 = vand.u32 2147483648, %v1918_v4  ;;  %vm1923_vm9 = vcmp.eq.f32.partialorder %v1918_v4, 0.0 }
 0x516   :  { %2802 = vrcp.f32 %v1912_v50 }
 0x51f   :  { %v2801_v54 = vpop.eup %2800 }
 0x520   :  { %v1920_v14 = vmul.f32 %v2801_v54, %v1918_v4  ;;  %v2803_v33 = vpop.eup %2802 }
 0x521   :  { %v1914_v9 = vmul.f32 %v2803_v33, %v3630_v6 }
 0x522   :  { %v1922_v11 = vsel %vm1921_vm8, %v1918_v4, %v1920_v14 }
 0x523   :  { %v1925_v2 = vsel %vm1923_vm9, %v1924_v10, %v1922_v11 }
 0x524   :  { %v1926_v8 = vmax.f32 %v1925_v2, 1e-12 }
 0x526   :  { %2804 = vrcp.f32 %v1926_v8 }
 0x530   :  { %v2805_v38 = vpop.eup %2804 }
 0x531   :  { %v1928_v16 = vmul.f32 %v2805_v38, %v1897_v55 }
 0x533   :  { %v1929_v17 = vsub.f32 %v1914_v9, %v1928_v16 }
 0x535   :  { %v1930_v18 = vmul.f32 %v1929_v17, %v1929_v17 }
 0x537   :  { %v1931_v19 = vsel %vm1901_vm4, %v1930_v18, 0.0 }
 0x538   :  { %1932 = vadd.xlane.f32.xlu1 %v1931_v19 }
 0x539   :  { %2826 = shalt.err (!%p2823_p4)
}
 0x53a   :  { %s2827_s16 = scalar_lea.hbm %s4038_s10, 32 }
 0x53b   :  { %p2828_p5 = scmp.ne.s32.totalorder %s4038_s10, %s2827_s16  ;;  %p2831_p6 = scmp.lt.u32.totalorder %s2827_s16, %s4038_s10 }
 0x53d   :  { %p2833_p7 = pnand %p2831_p6, %p2828_p5 }
 0x53f   :  { %2836 = shalt.err (!%p2833_p7)
}
 0x540   :  { %1967 = dma.vmem_to_hbm [thread:$0]  %s1965_s4, 32, %s4038_s10, [#allocation5]  }
 0x541   :  { %s2837_s22 = scalar_lea.vmem %s1955_s8, 32  ;;  %p2842_p9 = scmp.lt.s32.totalorder %s1955_s8, %s1955_s8 }
 0x542   :  { %p2838_p8 = scmp.ne.s32.totalorder %s1955_s8, %s2837_s22  ;;  %p2843_p10 = scmp.lt.s32.totalorder %s2837_s22, %s2837_s22 }
 0x544   :  { %p2844_p11 = por %p2843_p10, %p2842_p9 }
 0x546   :  { %p2845_p12 = pnand %p2844_p11, %p2838_p8 }
 0x548   :  { %2848 = shalt.err (!%p2845_p12)
}
 0x549   :  { %s2849_s24 = scalar_lea.hbm %s4037_s9, 32 }
 0x54a   :  { %p2850_p13 = scmp.ne.s32.totalorder %s4037_s9, %s2849_s24  ;;  %p2853_p0 = scmp.lt.u32.totalorder %s2849_s24, %s4037_s9 }
 0x54c   :  { %p2855_p1 = pnand %p2853_p0, %p2850_p13 }
 0x54e   :  { %2858 = shalt.err (!%p2855_p1)
}
 0x54f   :  { %1957 = dma.vmem_to_hbm [thread:$0]  %s1955_s8, 32, %s4037_s9, [#allocation3]   ;;  %vm1934_vm10 = vcmask 1041408   ;;  %vm1946_vm11 = vcmask 0  }
 0x550   :  { %s2891_s29 = smov [#allocation6]  }
 0x551   :  { %s1974_s30 = sshll.u32 %s2891_s29, 4  ;;  %s1975_s30 = int_to_ptr.vmem [resolvable:$true] %s1974_s30 }
 0x552   :  { %s2859_s12 = scalar_lea.vmem %s1975_s30, 16  ;;  %s2863_s6 = scalar_lea.vmem %s1975_s30, 32 }
 0x553   :  { %p2860_p2 = scmp.ne.s32.totalorder %s1975_s30, %s2859_s12  ;;  %p2864_p3 = scmp.lt.s32.totalorder %s1975_s30, %s1975_s30 }
 0x554   :  { %p2865_p4 = scmp.lt.s32.totalorder %s2863_s6, %s2859_s12 }
 0x556   :  { %p2866_p5 = por %p2865_p4, %p2864_p3 }
 0x558   :  { %p2867_p6 = pnand %p2866_p5, %p2860_p2 }
 0x5c5   :  { %v1933_v6 = vpop.xlane.xlu1 %1932 }
 0x5c6   :  { %v1935_v20 = vsel %vm1934_vm10, %v1933_v6, 0.0 }
 0x5c7   :  { %v1936_v21 = vrot.slane %v1935_v20, 4 }
 0x5c9   :  { %v1937_v42 = vadd.f32 %v1936_v21, %v1935_v20 }
 0x5cb   :  { %v1938_v46 = vrot.slane %v1937_v42, 2 }
 0x5cd   :  { %v1939_v23 = vadd.f32 %v1938_v46, %v1937_v42 }
 0x5cf   :  { %v1940_v25 = vrot.slane %v1939_v23, 1 }
 0x5d1   :  { %v1941_v26 = vadd.f32 %v1940_v25, %v1939_v23 }
 0x5d3   :  { %v1942_v27 = vmul.f32 0.5, %v1941_v26 }
 0x5d5   :  { %1947 = vst.msk [vmem:[#allocation6] sm:$0x1] %vm1946_vm11, %v1942_v27 }
 0x5d6   :  { %2870 = shalt.err (!%p2867_p6)
}
 0x5d7   :  { %s2871_s3 = scalar_lea.hbm %s4039_s11, 16 }
 0x5d8   :  { %p2872_p7 = scmp.ne.s32.totalorder %s4039_s11, %s2871_s3  ;;  %p2875_p8 = scmp.lt.u32.totalorder %s2871_s3, %s4039_s11 }
 0x5da   :  { %p2877_p9 = pnand %p2875_p8, %p2872_p7 }
 0x5dc   :  { %2880 = shalt.err (!%p2877_p9)
}
 0x5dd   :  { %1977 = dma.vmem_to_hbm [thread:$0]  %s1975_s30, 16, %s4039_s11, [#allocation5]  }
 0x5de   :  { %2881 = dma.done.wait [#allocation3], 32  }
 0x5df   :  { %2882 = vsyncadd [#allocation3], 4294967264 }
 0x5e0   :  { %2883 = dma.done.wait [#allocation5], 48  }
 0x5e1   :  { %2884 = vsyncadd [#allocation5], 4294967248 }
 0x5e2   :  { %1987 = vsyncpa [#allocation3], 1 }
 0x5e3   :  { %1988 = vsyncpa [#allocation5], 1 }

</bundles_post_ra>
